<compile_context>
chip_gen: v7x
topology: tpu7x:2x2x1
jax: 0.10.0
libtpu: 0.0.40
codegen_flags: <defaults>
</compile_context>

<pallas_src>
import functools

import jax
import jax.numpy as jnp
from jax.experimental import pallas as pl
from jax.experimental.pallas import tpu as pltpu

KSIZE = 7
PAD = 3


def _spatial_attn_kernel(w_ref, b_ref, mask_ref, x_ref, o_ref, flat_ref, *,
                         H, W, C):
    # w_ref   : SMEM (2*7*7,)        flattened conv weights (out=1, in=2, 7, 7)
    # b_ref   : SMEM (1,)            conv bias
    # mask_ref: VMEM (7, H*W)        per-kx column-validity masks (0.0 / 1.0)
    # x_ref   : VMEM (1, C, H*W)     current batch element (lane-dense)
    # o_ref   : VMEM (1, C, H*W)     output block
    # flat_ref: VMEM (2, L)          zero-padded flat pooled maps (scratch)
    HW = H * W
    pad_flat = PAD * W + PAD                      # logical flat zero-pad (3W+3)
    pf = ((pad_flat + 127) // 128) * 128          # data offset, lane-aligned
    offset_base = pf - pad_flat                   # tap start = base + ky*W + kx

    # -- Phase 1: channel max / mean pooling on the lane-dense (C, HW) view.
    xf = x_ref[0].astype(jnp.float32)                       # (C, HW)
    max_pool = jnp.max(xf, axis=0, keepdims=True)           # (1, HW)
    avg_pool = jnp.sum(xf, axis=0, keepdims=True) * (1.0 / C)

    # -- Phase 2: place pooled maps into the zero-padded flat scratch.
    #    (Scratch persists across grid steps, but re-zeroing every step is a
    #     handful of vreg stores and keeps megacore sharding correct.)
    flat_ref[...] = jnp.zeros(flat_ref.shape, flat_ref.dtype)
    flat_ref[0:1, pl.ds(pf, HW)] = max_pool
    flat_ref[1:2, pl.ds(pf, HW)] = avg_pool

    # -- Phase 3: 7x7 "same" conv as 98 static ref-slice taps.
    #    out_flat[j] = sum_{ky,kx} w[c,ky,kx] * flat[c, base + ky*W + kx + j]
    #    with per-kx column masks cancelling taps that wrapped across a row.
    zero = jnp.zeros((1, HW), jnp.float32)
    acc_m = zero
    acc_a = zero
    for kx in range(KSIZE):
        pm0, pm1, pa0, pa1 = zero, zero, zero, zero   # independent partials
        for ky in range(KSIZE):
            s = offset_base + ky * W + kx             # static lane offset
            tap_m = flat_ref[0:1, pl.ds(s, HW)]
            tap_a = flat_ref[1:2, pl.ds(s, HW)]
            wm = w_ref[ky * KSIZE + kx]
            wa = w_ref[KSIZE * KSIZE + ky * KSIZE + kx]
            if ky % 2 == 0:
                pm0 = pm0 + wm * tap_m
                pa0 = pa0 + wa * tap_a
            else:
                pm1 = pm1 + wm * tap_m
                pa1 = pa1 + wa * tap_a
        col_mask = mask_ref[kx:kx + 1, :]              # (1, HW)
        acc_m = acc_m + col_mask * (pm0 + pm1)
        acc_a = acc_a + col_mask * (pa0 + pa1)

    ms = jax.nn.sigmoid(acc_m + acc_a + b_ref[0])      # (1, HW) attention map

    # -- Phase 4: gated multiply; single full lane-dense store.
    o_ref[0] = (ms * x_ref[0].astype(jnp.float32)).astype(o_ref.dtype)


@jax.jit
def spatial_attention(x, conv_w, conv_b):
    """x: (B, C, H, W); conv_w: (1, 2, 7, 7); conv_b: (1,)."""
    B, C, H, W = x.shape
    HW = H * W
    pad_flat = PAD * W + PAD
    pf = ((pad_flat + 127) // 128) * 128
    flat_len = pf + HW + pad_flat                    # front pad + data + rear pad

    x2 = x.reshape(B, C, HW)                         # lane-dense last dim (free)
    w_flat = conv_w.reshape(-1).astype(jnp.float32)  # (98,)
    bias = conv_b.astype(jnp.float32)                # (1,)

    # Per-kx column masks: tap (ky, kx) at output column x0 is valid iff
    # 0 <= x0 + kx - PAD < W (otherwise the flat tap wrapped across a row).
    x0 = jnp.arange(HW, dtype=jnp.int32) % W
    col_mask = jnp.stack(
        [((x0 + kx >= PAD) & (x0 + kx < W + PAD)).astype(jnp.float32)
         for kx in range(KSIZE)], axis=0)            # (7, HW)

    kernel = functools.partial(_spatial_attn_kernel, H=H, W=W, C=C)

    # VMEM budget: double-buffered input + output blocks, mask block, the flat
    # conv scratch, plus headroom for in-kernel temporaries.  Capped at 64 MiB
    # so the request is also legal on v7x.
    blk_bytes = C * HW * jnp.dtype(x.dtype).itemsize
    vmem_limit = int(min(64 * 1024 * 1024,
                         4 * blk_bytes
                         + 2 * KSIZE * HW * 4
                         + 2 * flat_len * 4
                         + (8 << 20)))

    out2 = pl.pallas_call(
        kernel,
        out_shape=jax.ShapeDtypeStruct((B, C, HW), x.dtype),
        grid_spec=pltpu.PrefetchScalarGridSpec(
            num_scalar_prefetch=0,
            grid=(B,),
            in_specs=[
                pl.BlockSpec(memory_space=pltpu.MemorySpace.SMEM),  # weights
                pl.BlockSpec(memory_space=pltpu.MemorySpace.SMEM),  # bias
                pl.BlockSpec((KSIZE, HW), lambda i: (0, 0)),        # col masks
                pl.BlockSpec((1, C, HW), lambda i: (i, 0, 0)),      # x
            ],
            out_specs=pl.BlockSpec((1, C, HW), lambda i: (i, 0, 0)),
            scratch_shapes=[pltpu.VMEM((2, flat_len), jnp.float32)],
        ),
        compiler_params=pltpu.CompilerParams(
            dimension_semantics=("parallel",),
            vmem_limit_bytes=vmem_limit),
    )(w_flat, bias, col_mask, x2)

    return out2.reshape(B, C, H, W)


def _reference(x, conv_w, conv_b):
    """Pure-JAX reference matching the PyTorch forward exactly."""
    max_pool = jnp.max(x, axis=1, keepdims=True)
    avg_pool = jnp.mean(x, axis=1, keepdims=True)
    x_cat = jnp.concatenate([max_pool, avg_pool], axis=1)      # (B, 2, H, W)
    conv = jax.lax.conv_general_dilated(
        x_cat, conv_w, window_strides=(1, 1),
        padding=((PAD, PAD), (PAD, PAD)),
        dimension_numbers=("NCHW", "OIHW", "NCHW"))
    conv = conv + conv_b.reshape(1, -1, 1, 1)
    return jax.nn.sigmoid(conv) * x


if __name__ == "__main__":
    key = jax.random.PRNGKey(0)
    k_x, k_w, k_b = jax.random.split(key, 3)

    B, C, H, W = 2, 4, 16, 16
    x = jax.random.normal(k_x, (B, C, H, W), dtype=jnp.float32)

    # Deterministic conv parameter init (uniform in +/- 1/sqrt(fan_in)),
    # same shapes as nn.Conv2d(2, 1, 7, padding=3).
    fan_in = 2 * KSIZE * KSIZE
    bound = 1.0 / (fan_in ** 0.5)
    conv_w = jax.random.uniform(k_w, (1, 2, KSIZE, KSIZE),
                                minval=-bound, maxval=bound, dtype=jnp.float32)
    conv_b = jax.random.uniform(k_b, (1,),
                                minval=-bound, maxval=bound, dtype=jnp.float32)

    out = spatial_attention(x, conv_w, conv_b)
    jax.block_until_ready(out)

    ref = _reference(x, conv_w, conv_b)
    assert out.shape == (B, C, H, W)
    assert jnp.allclose(out, ref, atol=1e-4, rtol=1e-4), "mismatch vs reference"

    print("KERNEL_OK")
</pallas_src>

<mosaic_0001>
module attributes {stable_mosaic.version = 11 : i64} {
  func.func @_spatial_attn_kernel(%arg0: i32, %arg1: memref<98xf32, #tpu.memory_space<smem>>, %arg2: memref<1xf32, #tpu.memory_space<smem>>, %arg3: memref<7x256xf32, #tpu.memory_space<vmem>>, %arg4: memref<1x4x256xf32, #tpu.memory_space<vmem>>, %arg5: memref<1x4x256xf32, #tpu.memory_space<vmem>>, %arg6: memref<2x435xf32, #tpu.memory_space<vmem>>) attributes {dimension_semantics = [#tpu.dimension_semantics<parallel>], iteration_bounds = array<i64: 2>, scalar_prefetch = 0 : i64, scratch_operands = 1 : i64, tpu.core_type = #tpu.core_type<tc>, window_params = [{transform_indices = @transform_0, window_bounds = array<i64: 98>}, {transform_indices = @transform_1, window_bounds = array<i64: 1>}, {pipeline_mode = #tpu.pipeline_mode<synchronous>, transform_indices = @transform_2, window_bounds = array<i64: 7, 256>}, {transform_indices = @transform_3, window_bounds = array<i64: 1, 4, 256>}, {transform_indices = @transform_4, window_bounds = array<i64: 1, 4, 256>}]} {
    %c0 = arith.constant 0 : index
    %c0_0 = arith.constant 0 : index
    %c0_1 = arith.constant 0 : index
    %0 = vector.load %arg4[%c0, %c0_0, %c0_1] : memref<1x4x256xf32, #tpu.memory_space<vmem>>, vector<1x4x256xf32>
    %1 = vector.shape_cast %0 : vector<1x4x256xf32> to vector<4x256xf32>
    %cst = arith.constant dense<0xFF800000> : vector<256xf32>
    %2 = vector.multi_reduction <maximumf>, %1, %cst [0] : vector<4x256xf32> to vector<256xf32>
    %3 = vector.shape_cast %2 : vector<256xf32> to vector<1x256xf32>
    %cst_2 = arith.constant dense<0.000000e+00> : vector<256xf32>
    %4 = vector.multi_reduction <add>, %1, %cst_2 [0] : vector<4x256xf32> to vector<256xf32>
    %5 = vector.shape_cast %4 : vector<256xf32> to vector<1x256xf32>
    %cst_3 = arith.constant 2.500000e-01 : f32
    %6 = vector.broadcast %cst_3 : f32 to vector<1x256xf32>
    %7 = arith.mulf %5, %6 : vector<1x256xf32>
    %cst_4 = arith.constant 0.000000e+00 : f32
    %8 = vector.broadcast %cst_4 : f32 to vector<2x435xf32>
    %c0_5 = arith.constant 0 : index
    %c0_6 = arith.constant 0 : index
    %9 = vector.load %arg6[%c0_5, %c0_6] : memref<2x435xf32, #tpu.memory_space<vmem>>, vector<2x435xf32>
    tpu.vector_store %arg6[%c0_5, %c0_6], %8 {strides = array<i32>} : memref<2x435xf32, #tpu.memory_space<vmem>>, vector<2x435xf32>,
    %c0_7 = arith.constant 0 : index
    %c128 = arith.constant 128 : index
    %10 = vector.load %arg6[%c0_7, %c128] : memref<2x435xf32, #tpu.memory_space<vmem>>, vector<1x256xf32>
    tpu.vector_store %arg6[%c0_7, %c128], %3 {strides = array<i32>} : memref<2x435xf32, #tpu.memory_space<vmem>>, vector<1x256xf32>,
    %c1 = arith.constant 1 : index
    %c128_8 = arith.constant 128 : index
    %11 = vector.load %arg6[%c1, %c128_8] : memref<2x435xf32, #tpu.memory_space<vmem>>, vector<1x256xf32>
    tpu.vector_store %arg6[%c1, %c128_8], %7 {strides = array<i32>} : memref<2x435xf32, #tpu.memory_space<vmem>>, vector<1x256xf32>,
    %cst_9 = arith.constant 0.000000e+00 : f32
    %12 = vector.broadcast %cst_9 : f32 to vector<1x256xf32>
    %c0_10 = arith.constant 0 : index
    %c77 = arith.constant 77 : index
    %13 = vector.load %arg6[%c0_10, %c77] : memref<2x435xf32, #tpu.memory_space<vmem>>, vector<1x256xf32>
    %c1_11 = arith.constant 1 : index
    %c77_12 = arith.constant 77 : index
    %14 = vector.load %arg6[%c1_11, %c77_12] : memref<2x435xf32, #tpu.memory_space<vmem>>, vector<1x256xf32>
    %c0_13 = arith.constant 0 : index
    %15 = memref.load %arg1[%c0_13] : memref<98xf32, #tpu.memory_space<smem>>
    %c49 = arith.constant 49 : index
    %16 = memref.load %arg1[%c49] : memref<98xf32, #tpu.memory_space<smem>>
    %17 = vector.broadcast %15 : f32 to vector<1x256xf32>
    %18 = arith.mulf %17, %13 : vector<1x256xf32>
    %19 = arith.addf %12, %18 : vector<1x256xf32>
    %20 = vector.broadcast %16 : f32 to vector<1x256xf32>
    %21 = arith.mulf %20, %14 : vector<1x256xf32>
    %22 = arith.addf %12, %21 : vector<1x256xf32>
    %c0_14 = arith.constant 0 : index
    %c93 = arith.constant 93 : index
    %23 = vector.load %arg6[%c0_14, %c93] : memref<2x435xf32, #tpu.memory_space<vmem>>, vector<1x256xf32>
    %c1_15 = arith.constant 1 : index
    %c93_16 = arith.constant 93 : index
    %24 = vector.load %arg6[%c1_15, %c93_16] : memref<2x435xf32, #tpu.memory_space<vmem>>, vector<1x256xf32>
    %c7 = arith.constant 7 : index
    %25 = memref.load %arg1[%c7] : memref<98xf32, #tpu.memory_space<smem>>
    %c56 = arith.constant 56 : index
    %26 = memref.load %arg1[%c56] : memref<98xf32, #tpu.memory_space<smem>>
    %27 = vector.broadcast %25 : f32 to vector<1x256xf32>
    %28 = arith.mulf %27, %23 : vector<1x256xf32>
    %29 = arith.addf %12, %28 : vector<1x256xf32>
    %30 = vector.broadcast %26 : f32 to vector<1x256xf32>
    %31 = arith.mulf %30, %24 : vector<1x256xf32>
    %32 = arith.addf %12, %31 : vector<1x256xf32>
    %c0_17 = arith.constant 0 : index
    %c109 = arith.constant 109 : index
    %33 = vector.load %arg6[%c0_17, %c109] : memref<2x435xf32, #tpu.memory_space<vmem>>, vector<1x256xf32>
    %c1_18 = arith.constant 1 : index
    %c109_19 = arith.constant 109 : index
    %34 = vector.load %arg6[%c1_18, %c109_19] : memref<2x435xf32, #tpu.memory_space<vmem>>, vector<1x256xf32>
    %c14 = arith.constant 14 : index
    %35 = memref.load %arg1[%c14] : memref<98xf32, #tpu.memory_space<smem>>
    %c63 = arith.constant 63 : index
    %36 = memref.load %arg1[%c63] : memref<98xf32, #tpu.memory_space<smem>>
    %37 = vector.broadcast %35 : f32 to vector<1x256xf32>
    %38 = arith.mulf %37, %33 : vector<1x256xf32>
    %39 = arith.addf %19, %38 : vector<1x256xf32>
    %40 = vector.broadcast %36 : f32 to vector<1x256xf32>
    %41 = arith.mulf %40, %34 : vector<1x256xf32>
    %42 = arith.addf %22, %41 : vector<1x256xf32>
    %c0_20 = arith.constant 0 : index
    %c125 = arith.constant 125 : index
    %43 = vector.load %arg6[%c0_20, %c125] : memref<2x435xf32, #tpu.memory_space<vmem>>, vector<1x256xf32>
    %c1_21 = arith.constant 1 : index
    %c125_22 = arith.constant 125 : index
    %44 = vector.load %arg6[%c1_21, %c125_22] : memref<2x435xf32, #tpu.memory_space<vmem>>, vector<1x256xf32>
    %c21 = arith.constant 21 : index
    %45 = memref.load %arg1[%c21] : memref<98xf32, #tpu.memory_space<smem>>
    %c70 = arith.constant 70 : index
    %46 = memref.load %arg1[%c70] : memref<98xf32, #tpu.memory_space<smem>>
    %47 = vector.broadcast %45 : f32 to vector<1x256xf32>
    %48 = arith.mulf %47, %43 : vector<1x256xf32>
    %49 = arith.addf %29, %48 : vector<1x256xf32>
    %50 = vector.broadcast %46 : f32 to vector<1x256xf32>
    %51 = arith.mulf %50, %44 : vector<1x256xf32>
    %52 = arith.addf %32, %51 : vector<1x256xf32>
    %c0_23 = arith.constant 0 : index
    %c141 = arith.constant 141 : index
    %53 = vector.load %arg6[%c0_23, %c141] : memref<2x435xf32, #tpu.memory_space<vmem>>, vector<1x256xf32>
    %c1_24 = arith.constant 1 : index
    %c141_25 = arith.constant 141 : index
    %54 = vector.load %arg6[%c1_24, %c141_25] : memref<2x435xf32, #tpu.memory_space<vmem>>, vector<1x256xf32>
    %c28 = arith.constant 28 : index
    %55 = memref.load %arg1[%c28] : memref<98xf32, #tpu.memory_space<smem>>
    %c77_26 = arith.constant 77 : index
    %56 = memref.load %arg1[%c77_26] : memref<98xf32, #tpu.memory_space<smem>>
    %57 = vector.broadcast %55 : f32 to vector<1x256xf32>
    %58 = arith.mulf %57, %53 : vector<1x256xf32>
    %59 = arith.addf %39, %58 : vector<1x256xf32>
    %60 = vector.broadcast %56 : f32 to vector<1x256xf32>
    %61 = arith.mulf %60, %54 : vector<1x256xf32>
    %62 = arith.addf %42, %61 : vector<1x256xf32>
    %c0_27 = arith.constant 0 : index
    %c157 = arith.constant 157 : index
    %63 = vector.load %arg6[%c0_27, %c157] : memref<2x435xf32, #tpu.memory_space<vmem>>, vector<1x256xf32>
    %c1_28 = arith.constant 1 : index
    %c157_29 = arith.constant 157 : index
    %64 = vector.load %arg6[%c1_28, %c157_29] : memref<2x435xf32, #tpu.memory_space<vmem>>, vector<1x256xf32>
    %c35 = arith.constant 35 : index
    %65 = memref.load %arg1[%c35] : memref<98xf32, #tpu.memory_space<smem>>
    %c84 = arith.constant 84 : index
    %66 = memref.load %arg1[%c84] : memref<98xf32, #tpu.memory_space<smem>>
    %67 = vector.broadcast %65 : f32 to vector<1x256xf32>
    %68 = arith.mulf %67, %63 : vector<1x256xf32>
    %69 = arith.addf %49, %68 : vector<1x256xf32>
    %70 = vector.broadcast %66 : f32 to vector<1x256xf32>
    %71 = arith.mulf %70, %64 : vector<1x256xf32>
    %72 = arith.addf %52, %71 : vector<1x256xf32>
    %c0_30 = arith.constant 0 : index
    %c173 = arith.constant 173 : index
    %73 = vector.load %arg6[%c0_30, %c173] : memref<2x435xf32, #tpu.memory_space<vmem>>, vector<1x256xf32>
    %c1_31 = arith.constant 1 : index
    %c173_32 = arith.constant 173 : index
    %74 = vector.load %arg6[%c1_31, %c173_32] : memref<2x435xf32, #tpu.memory_space<vmem>>, vector<1x256xf32>
    %c42 = arith.constant 42 : index
    %75 = memref.load %arg1[%c42] : memref<98xf32, #tpu.memory_space<smem>>
    %c91 = arith.constant 91 : index
    %76 = memref.load %arg1[%c91] : memref<98xf32, #tpu.memory_space<smem>>
    %77 = vector.broadcast %75 : f32 to vector<1x256xf32>
    %78 = arith.mulf %77, %73 : vector<1x256xf32>
    %79 = arith.addf %59, %78 : vector<1x256xf32>
    %80 = vector.broadcast %76 : f32 to vector<1x256xf32>
    %81 = arith.mulf %80, %74 : vector<1x256xf32>
    %82 = arith.addf %62, %81 : vector<1x256xf32>
    %c0_33 = arith.constant 0 : index
    %c0_34 = arith.constant 0 : index
    %83 = vector.load %arg3[%c0_33, %c0_34] : memref<7x256xf32, #tpu.memory_space<vmem>>, vector<1x256xf32>
    %84 = arith.addf %79, %69 : vector<1x256xf32>
    %85 = arith.mulf %83, %84 : vector<1x256xf32>
    %86 = arith.addf %12, %85 : vector<1x256xf32>
    %87 = arith.addf %82, %72 : vector<1x256xf32>
    %88 = arith.mulf %83, %87 : vector<1x256xf32>
    %89 = arith.addf %12, %88 : vector<1x256xf32>
    %c0_35 = arith.constant 0 : index
    %c78 = arith.constant 78 : index
    %90 = vector.load %arg6[%c0_35, %c78] : memref<2x435xf32, #tpu.memory_space<vmem>>, vector<1x256xf32>
    %c1_36 = arith.constant 1 : index
    %c78_37 = arith.constant 78 : index
    %91 = vector.load %arg6[%c1_36, %c78_37] : memref<2x435xf32, #tpu.memory_space<vmem>>, vector<1x256xf32>
    %c1_38 = arith.constant 1 : index
    %92 = memref.load %arg1[%c1_38] : memref<98xf32, #tpu.memory_space<smem>>
    %c50 = arith.constant 50 : index
    %93 = memref.load %arg1[%c50] : memref<98xf32, #tpu.memory_space<smem>>
    %94 = vector.broadcast %92 : f32 to vector<1x256xf32>
    %95 = arith.mulf %94, %90 : vector<1x256xf32>
    %96 = arith.addf %12, %95 : vector<1x256xf32>
    %97 = vector.broadcast %93 : f32 to vector<1x256xf32>
    %98 = arith.mulf %97, %91 : vector<1x256xf32>
    %99 = arith.addf %12, %98 : vector<1x256xf32>
    %c0_39 = arith.constant 0 : index
    %c94 = arith.constant 94 : index
    %100 = vector.load %arg6[%c0_39, %c94] : memref<2x435xf32, #tpu.memory_space<vmem>>, vector<1x256xf32>
    %c1_40 = arith.constant 1 : index
    %c94_41 = arith.constant 94 : index
    %101 = vector.load %arg6[%c1_40, %c94_41] : memref<2x435xf32, #tpu.memory_space<vmem>>, vector<1x256xf32>
    %c8 = arith.constant 8 : index
    %102 = memref.load %arg1[%c8] : memref<98xf32, #tpu.memory_space<smem>>
    %c57 = arith.constant 57 : index
    %103 = memref.load %arg1[%c57] : memref<98xf32, #tpu.memory_space<smem>>
    %104 = vector.broadcast %102 : f32 to vector<1x256xf32>
    %105 = arith.mulf %104, %100 : vector<1x256xf32>
    %106 = arith.addf %12, %105 : vector<1x256xf32>
    %107 = vector.broadcast %103 : f32 to vector<1x256xf32>
    %108 = arith.mulf %107, %101 : vector<1x256xf32>
    %109 = arith.addf %12, %108 : vector<1x256xf32>
    %c0_42 = arith.constant 0 : index
    %c110 = arith.constant 110 : index
    %110 = vector.load %arg6[%c0_42, %c110] : memref<2x435xf32, #tpu.memory_space<vmem>>, vector<1x256xf32>
    %c1_43 = arith.constant 1 : index
    %c110_44 = arith.constant 110 : index
    %111 = vector.load %arg6[%c1_43, %c110_44] : memref<2x435xf32, #tpu.memory_space<vmem>>, vector<1x256xf32>
    %c15 = arith.constant 15 : index
    %112 = memref.load %arg1[%c15] : memref<98xf32, #tpu.memory_space<smem>>
    %c64 = arith.constant 64 : index
    %113 = memref.load %arg1[%c64] : memref<98xf32, #tpu.memory_space<smem>>
    %114 = vector.broadcast %112 : f32 to vector<1x256xf32>
    %115 = arith.mulf %114, %110 : vector<1x256xf32>
    %116 = arith.addf %96, %115 : vector<1x256xf32>
    %117 = vector.broadcast %113 : f32 to vector<1x256xf32>
    %118 = arith.mulf %117, %111 : vector<1x256xf32>
    %119 = arith.addf %99, %118 : vector<1x256xf32>
    %c0_45 = arith.constant 0 : index
    %c126 = arith.constant 126 : index
    %120 = vector.load %arg6[%c0_45, %c126] : memref<2x435xf32, #tpu.memory_space<vmem>>, vector<1x256xf32>
    %c1_46 = arith.constant 1 : index
    %c126_47 = arith.constant 126 : index
    %121 = vector.load %arg6[%c1_46, %c126_47] : memref<2x435xf32, #tpu.memory_space<vmem>>, vector<1x256xf32>
    %c22 = arith.constant 22 : index
    %122 = memref.load %arg1[%c22] : memref<98xf32, #tpu.memory_space<smem>>
    %c71 = arith.constant 71 : index
    %123 = memref.load %arg1[%c71] : memref<98xf32, #tpu.memory_space<smem>>
    %124 = vector.broadcast %122 : f32 to vector<1x256xf32>
    %125 = arith.mulf %124, %120 : vector<1x256xf32>
    %126 = arith.addf %106, %125 : vector<1x256xf32>
    %127 = vector.broadcast %123 : f32 to vector<1x256xf32>
    %128 = arith.mulf %127, %121 : vector<1x256xf32>
    %129 = arith.addf %109, %128 : vector<1x256xf32>
    %c0_48 = arith.constant 0 : index
    %c142 = arith.constant 142 : index
    %130 = vector.load %arg6[%c0_48, %c142] : memref<2x435xf32, #tpu.memory_space<vmem>>, vector<1x256xf32>
    %c1_49 = arith.constant 1 : index
    %c142_50 = arith.constant 142 : index
    %131 = vector.load %arg6[%c1_49, %c142_50] : memref<2x435xf32, #tpu.memory_space<vmem>>, vector<1x256xf32>
    %c29 = arith.constant 29 : index
    %132 = memref.load %arg1[%c29] : memref<98xf32, #tpu.memory_space<smem>>
    %c78_51 = arith.constant 78 : index
    %133 = memref.load %arg1[%c78_51] : memref<98xf32, #tpu.memory_space<smem>>
    %134 = vector.broadcast %132 : f32 to vector<1x256xf32>
    %135 = arith.mulf %134, %130 : vector<1x256xf32>
    %136 = arith.addf %116, %135 : vector<1x256xf32>
    %137 = vector.broadcast %133 : f32 to vector<1x256xf32>
    %138 = arith.mulf %137, %131 : vector<1x256xf32>
    %139 = arith.addf %119, %138 : vector<1x256xf32>
    %c0_52 = arith.constant 0 : index
    %c158 = arith.constant 158 : index
    %140 = vector.load %arg6[%c0_52, %c158] : memref<2x435xf32, #tpu.memory_space<vmem>>, vector<1x256xf32>
    %c1_53 = arith.constant 1 : index
    %c158_54 = arith.constant 158 : index
    %141 = vector.load %arg6[%c1_53, %c158_54] : memref<2x435xf32, #tpu.memory_space<vmem>>, vector<1x256xf32>
    %c36 = arith.constant 36 : index
    %142 = memref.load %arg1[%c36] : memref<98xf32, #tpu.memory_space<smem>>
    %c85 = arith.constant 85 : index
    %143 = memref.load %arg1[%c85] : memref<98xf32, #tpu.memory_space<smem>>
    %144 = vector.broadcast %142 : f32 to vector<1x256xf32>
    %145 = arith.mulf %144, %140 : vector<1x256xf32>
    %146 = arith.addf %126, %145 : vector<1x256xf32>
    %147 = vector.broadcast %143 : f32 to vector<1x256xf32>
    %148 = arith.mulf %147, %141 : vector<1x256xf32>
    %149 = arith.addf %129, %148 : vector<1x256xf32>
    %c0_55 = arith.constant 0 : index
    %c174 = arith.constant 174 : index
    %150 = vector.load %arg6[%c0_55, %c174] : memref<2x435xf32, #tpu.memory_space<vmem>>, vector<1x256xf32>
    %c1_56 = arith.constant 1 : index
    %c174_57 = arith.constant 174 : index
    %151 = vector.load %arg6[%c1_56, %c174_57] : memref<2x435xf32, #tpu.memory_space<vmem>>, vector<1x256xf32>
    %c43 = arith.constant 43 : index
    %152 = memref.load %arg1[%c43] : memref<98xf32, #tpu.memory_space<smem>>
    %c92 = arith.constant 92 : index
    %153 = memref.load %arg1[%c92] : memref<98xf32, #tpu.memory_space<smem>>
    %154 = vector.broadcast %152 : f32 to vector<1x256xf32>
    %155 = arith.mulf %154, %150 : vector<1x256xf32>
    %156 = arith.addf %136, %155 : vector<1x256xf32>
    %157 = vector.broadcast %153 : f32 to vector<1x256xf32>
    %158 = arith.mulf %157, %151 : vector<1x256xf32>
    %159 = arith.addf %139, %158 : vector<1x256xf32>
    %c1_58 = arith.constant 1 : index
    %c0_59 = arith.constant 0 : index
    %160 = vector.load %arg3[%c1_58, %c0_59] : memref<7x256xf32, #tpu.memory_space<vmem>>, vector<1x256xf32>
    %161 = arith.addf %156, %146 : vector<1x256xf32>
    %162 = arith.mulf %160, %161 : vector<1x256xf32>
    %163 = arith.addf %86, %162 : vector<1x256xf32>
    %164 = arith.addf %159, %149 : vector<1x256xf32>
    %165 = arith.mulf %160, %164 : vector<1x256xf32>
    %166 = arith.addf %89, %165 : vector<1x256xf32>
    %c0_60 = arith.constant 0 : index
    %c79 = arith.constant 79 : index
    %167 = vector.load %arg6[%c0_60, %c79] : memref<2x435xf32, #tpu.memory_space<vmem>>, vector<1x256xf32>
    %c1_61 = arith.constant 1 : index
    %c79_62 = arith.constant 79 : index
    %168 = vector.load %arg6[%c1_61, %c79_62] : memref<2x435xf32, #tpu.memory_space<vmem>>, vector<1x256xf32>
    %c2 = arith.constant 2 : index
    %169 = memref.load %arg1[%c2] : memref<98xf32, #tpu.memory_space<smem>>
    %c51 = arith.constant 51 : index
    %170 = memref.load %arg1[%c51] : memref<98xf32, #tpu.memory_space<smem>>
    %171 = vector.broadcast %169 : f32 to vector<1x256xf32>
    %172 = arith.mulf %171, %167 : vector<1x256xf32>
    %173 = arith.addf %12, %172 : vector<1x256xf32>
    %174 = vector.broadcast %170 : f32 to vector<1x256xf32>
    %175 = arith.mulf %174, %168 : vector<1x256xf32>
    %176 = arith.addf %12, %175 : vector<1x256xf32>
    %c0_63 = arith.constant 0 : index
    %c95 = arith.constant 95 : index
    %177 = vector.load %arg6[%c0_63, %c95] : memref<2x435xf32, #tpu.memory_space<vmem>>, vector<1x256xf32>
    %c1_64 = arith.constant 1 : index
    %c95_65 = arith.constant 95 : index
    %178 = vector.load %arg6[%c1_64, %c95_65] : memref<2x435xf32, #tpu.memory_space<vmem>>, vector<1x256xf32>
    %c9 = arith.constant 9 : index
    %179 = memref.load %arg1[%c9] : memref<98xf32, #tpu.memory_space<smem>>
    %c58 = arith.constant 58 : index
    %180 = memref.load %arg1[%c58] : memref<98xf32, #tpu.memory_space<smem>>
    %181 = vector.broadcast %179 : f32 to vector<1x256xf32>
    %182 = arith.mulf %181, %177 : vector<1x256xf32>
    %183 = arith.addf %12, %182 : vector<1x256xf32>
    %184 = vector.broadcast %180 : f32 to vector<1x256xf32>
    %185 = arith.mulf %184, %178 : vector<1x256xf32>
    %186 = arith.addf %12, %185 : vector<1x256xf32>
    %c0_66 = arith.constant 0 : index
    %c111 = arith.constant 111 : index
    %187 = vector.load %arg6[%c0_66, %c111] : memref<2x435xf32, #tpu.memory_space<vmem>>, vector<1x256xf32>
    %c1_67 = arith.constant 1 : index
    %c111_68 = arith.constant 111 : index
    %188 = vector.load %arg6[%c1_67, %c111_68] : memref<2x435xf32, #tpu.memory_space<vmem>>, vector<1x256xf32>
    %c16 = arith.constant 16 : index
    %189 = memref.load %arg1[%c16] : memref<98xf32, #tpu.memory_space<smem>>
    %c65 = arith.constant 65 : index
    %190 = memref.load %arg1[%c65] : memref<98xf32, #tpu.memory_space<smem>>
    %191 = vector.broadcast %189 : f32 to vector<1x256xf32>
    %192 = arith.mulf %191, %187 : vector<1x256xf32>
    %193 = arith.addf %173, %192 : vector<1x256xf32>
    %194 = vector.broadcast %190 : f32 to vector<1x256xf32>
    %195 = arith.mulf %194, %188 : vector<1x256xf32>
    %196 = arith.addf %176, %195 : vector<1x256xf32>
    %c0_69 = arith.constant 0 : index
    %c127 = arith.constant 127 : index
    %197 = vector.load %arg6[%c0_69, %c127] : memref<2x435xf32, #tpu.memory_space<vmem>>, vector<1x256xf32>
    %c1_70 = arith.constant 1 : index
    %c127_71 = arith.constant 127 : index
    %198 = vector.load %arg6[%c1_70, %c127_71] : memref<2x435xf32, #tpu.memory_space<vmem>>, vector<1x256xf32>
    %c23 = arith.constant 23 : index
    %199 = memref.load %arg1[%c23] : memref<98xf32, #tpu.memory_space<smem>>
    %c72 = arith.constant 72 : index
    %200 = memref.load %arg1[%c72] : memref<98xf32, #tpu.memory_space<smem>>
    %201 = vector.broadcast %199 : f32 to vector<1x256xf32>
    %202 = arith.mulf %201, %197 : vector<1x256xf32>
    %203 = arith.addf %183, %202 : vector<1x256xf32>
    %204 = vector.broadcast %200 : f32 to vector<1x256xf32>
    %205 = arith.mulf %204, %198 : vector<1x256xf32>
    %206 = arith.addf %186, %205 : vector<1x256xf32>
    %c0_72 = arith.constant 0 : index
    %c143 = arith.constant 143 : index
    %207 = vector.load %arg6[%c0_72, %c143] : memref<2x435xf32, #tpu.memory_space<vmem>>, vector<1x256xf32>
    %c1_73 = arith.constant 1 : index
    %c143_74 = arith.constant 143 : index
    %208 = vector.load %arg6[%c1_73, %c143_74] : memref<2x435xf32, #tpu.memory_space<vmem>>, vector<1x256xf32>
    %c30 = arith.constant 30 : index
    %209 = memref.load %arg1[%c30] : memref<98xf32, #tpu.memory_space<smem>>
    %c79_75 = arith.constant 79 : index
    %210 = memref.load %arg1[%c79_75] : memref<98xf32, #tpu.memory_space<smem>>
    %211 = vector.broadcast %209 : f32 to vector<1x256xf32>
    %212 = arith.mulf %211, %207 : vector<1x256xf32>
    %213 = arith.addf %193, %212 : vector<1x256xf32>
    %214 = vector.broadcast %210 : f32 to vector<1x256xf32>
    %215 = arith.mulf %214, %208 : vector<1x256xf32>
    %216 = arith.addf %196, %215 : vector<1x256xf32>
    %c0_76 = arith.constant 0 : index
    %c159 = arith.constant 159 : index
    %217 = vector.load %arg6[%c0_76, %c159] : memref<2x435xf32, #tpu.memory_space<vmem>>, vector<1x256xf32>
    %c1_77 = arith.constant 1 : index
    %c159_78 = arith.constant 159 : index
    %218 = vector.load %arg6[%c1_77, %c159_78] : memref<2x435xf32, #tpu.memory_space<vmem>>, vector<1x256xf32>
    %c37 = arith.constant 37 : index
    %219 = memref.load %arg1[%c37] : memref<98xf32, #tpu.memory_space<smem>>
    %c86 = arith.constant 86 : index
    %220 = memref.load %arg1[%c86] : memref<98xf32, #tpu.memory_space<smem>>
    %221 = vector.broadcast %219 : f32 to vector<1x256xf32>
    %222 = arith.mulf %221, %217 : vector<1x256xf32>
    %223 = arith.addf %203, %222 : vector<1x256xf32>
    %224 = vector.broadcast %220 : f32 to vector<1x256xf32>
    %225 = arith.mulf %224, %218 : vector<1x256xf32>
    %226 = arith.addf %206, %225 : vector<1x256xf32>
    %c0_79 = arith.constant 0 : index
    %c175 = arith.constant 175 : index
    %227 = vector.load %arg6[%c0_79, %c175] : memref<2x435xf32, #tpu.memory_space<vmem>>, vector<1x256xf32>
    %c1_80 = arith.constant 1 : index
    %c175_81 = arith.constant 175 : index
    %228 = vector.load %arg6[%c1_80, %c175_81] : memref<2x435xf32, #tpu.memory_space<vmem>>, vector<1x256xf32>
    %c44 = arith.constant 44 : index
    %229 = memref.load %arg1[%c44] : memref<98xf32, #tpu.memory_space<smem>>
    %c93_82 = arith.constant 93 : index
    %230 = memref.load %arg1[%c93_82] : memref<98xf32, #tpu.memory_space<smem>>
    %231 = vector.broadcast %229 : f32 to vector<1x256xf32>
    %232 = arith.mulf %231, %227 : vector<1x256xf32>
    %233 = arith.addf %213, %232 : vector<1x256xf32>
    %234 = vector.broadcast %230 : f32 to vector<1x256xf32>
    %235 = arith.mulf %234, %228 : vector<1x256xf32>
    %236 = arith.addf %216, %235 : vector<1x256xf32>
    %c2_83 = arith.constant 2 : index
    %c0_84 = arith.constant 0 : index
    %237 = vector.load %arg3[%c2_83, %c0_84] : memref<7x256xf32, #tpu.memory_space<vmem>>, vector<1x256xf32>
    %238 = arith.addf %233, %223 : vector<1x256xf32>
    %239 = arith.mulf %237, %238 : vector<1x256xf32>
    %240 = arith.addf %163, %239 : vector<1x256xf32>
    %241 = arith.addf %236, %226 : vector<1x256xf32>
    %242 = arith.mulf %237, %241 : vector<1x256xf32>
    %243 = arith.addf %166, %242 : vector<1x256xf32>
    %c0_85 = arith.constant 0 : index
    %c80 = arith.constant 80 : index
    %244 = vector.load %arg6[%c0_85, %c80] : memref<2x435xf32, #tpu.memory_space<vmem>>, vector<1x256xf32>
    %c1_86 = arith.constant 1 : index
    %c80_87 = arith.constant 80 : index
    %245 = vector.load %arg6[%c1_86, %c80_87] : memref<2x435xf32, #tpu.memory_space<vmem>>, vector<1x256xf32>
    %c3 = arith.constant 3 : index
    %246 = memref.load %arg1[%c3] : memref<98xf32, #tpu.memory_space<smem>>
    %c52 = arith.constant 52 : index
    %247 = memref.load %arg1[%c52] : memref<98xf32, #tpu.memory_space<smem>>
    %248 = vector.broadcast %246 : f32 to vector<1x256xf32>
    %249 = arith.mulf %248, %244 : vector<1x256xf32>
    %250 = arith.addf %12, %249 : vector<1x256xf32>
    %251 = vector.broadcast %247 : f32 to vector<1x256xf32>
    %252 = arith.mulf %251, %245 : vector<1x256xf32>
    %253 = arith.addf %12, %252 : vector<1x256xf32>
    %c0_88 = arith.constant 0 : index
    %c96 = arith.constant 96 : index
    %254 = vector.load %arg6[%c0_88, %c96] : memref<2x435xf32, #tpu.memory_space<vmem>>, vector<1x256xf32>
    %c1_89 = arith.constant 1 : index
    %c96_90 = arith.constant 96 : index
    %255 = vector.load %arg6[%c1_89, %c96_90] : memref<2x435xf32, #tpu.memory_space<vmem>>, vector<1x256xf32>
    %c10 = arith.constant 10 : index
    %256 = memref.load %arg1[%c10] : memref<98xf32, #tpu.memory_space<smem>>
    %c59 = arith.constant 59 : index
    %257 = memref.load %arg1[%c59] : memref<98xf32, #tpu.memory_space<smem>>
    %258 = vector.broadcast %256 : f32 to vector<1x256xf32>
    %259 = arith.mulf %258, %254 : vector<1x256xf32>
    %260 = arith.addf %12, %259 : vector<1x256xf32>
    %261 = vector.broadcast %257 : f32 to vector<1x256xf32>
    %262 = arith.mulf %261, %255 : vector<1x256xf32>
    %263 = arith.addf %12, %262 : vector<1x256xf32>
    %c0_91 = arith.constant 0 : index
    %c112 = arith.constant 112 : index
    %264 = vector.load %arg6[%c0_91, %c112] : memref<2x435xf32, #tpu.memory_space<vmem>>, vector<1x256xf32>
    %c1_92 = arith.constant 1 : index
    %c112_93 = arith.constant 112 : index
    %265 = vector.load %arg6[%c1_92, %c112_93] : memref<2x435xf32, #tpu.memory_space<vmem>>, vector<1x256xf32>
    %c17 = arith.constant 17 : index
    %266 = memref.load %arg1[%c17] : memref<98xf32, #tpu.memory_space<smem>>
    %c66 = arith.constant 66 : index
    %267 = memref.load %arg1[%c66] : memref<98xf32, #tpu.memory_space<smem>>
    %268 = vector.broadcast %266 : f32 to vector<1x256xf32>
    %269 = arith.mulf %268, %264 : vector<1x256xf32>
    %270 = arith.addf %250, %269 : vector<1x256xf32>
    %271 = vector.broadcast %267 : f32 to vector<1x256xf32>
    %272 = arith.mulf %271, %265 : vector<1x256xf32>
    %273 = arith.addf %253, %272 : vector<1x256xf32>
    %c0_94 = arith.constant 0 : index
    %c128_95 = arith.constant 128 : index
    %274 = vector.load %arg6[%c0_94, %c128_95] : memref<2x435xf32, #tpu.memory_space<vmem>>, vector<1x256xf32>
    %c1_96 = arith.constant 1 : index
    %c128_97 = arith.constant 128 : index
    %275 = vector.load %arg6[%c1_96, %c128_97] : memref<2x435xf32, #tpu.memory_space<vmem>>, vector<1x256xf32>
    %c24 = arith.constant 24 : index
    %276 = memref.load %arg1[%c24] : memref<98xf32, #tpu.memory_space<smem>>
    %c73 = arith.constant 73 : index
    %277 = memref.load %arg1[%c73] : memref<98xf32, #tpu.memory_space<smem>>
    %278 = vector.broadcast %276 : f32 to vector<1x256xf32>
    %279 = arith.mulf %278, %274 : vector<1x256xf32>
    %280 = arith.addf %260, %279 : vector<1x256xf32>
    %281 = vector.broadcast %277 : f32 to vector<1x256xf32>
    %282 = arith.mulf %281, %275 : vector<1x256xf32>
    %283 = arith.addf %263, %282 : vector<1x256xf32>
    %c0_98 = arith.constant 0 : index
    %c144 = arith.constant 144 : index
    %284 = vector.load %arg6[%c0_98, %c144] : memref<2x435xf32, #tpu.memory_space<vmem>>, vector<1x256xf32>
    %c1_99 = arith.constant 1 : index
    %c144_100 = arith.constant 144 : index
    %285 = vector.load %arg6[%c1_99, %c144_100] : memref<2x435xf32, #tpu.memory_space<vmem>>, vector<1x256xf32>
    %c31 = arith.constant 31 : index
    %286 = memref.load %arg1[%c31] : memref<98xf32, #tpu.memory_space<smem>>
    %c80_101 = arith.constant 80 : index
    %287 = memref.load %arg1[%c80_101] : memref<98xf32, #tpu.memory_space<smem>>
    %288 = vector.broadcast %286 : f32 to vector<1x256xf32>
    %289 = arith.mulf %288, %284 : vector<1x256xf32>
    %290 = arith.addf %270, %289 : vector<1x256xf32>
    %291 = vector.broadcast %287 : f32 to vector<1x256xf32>
    %292 = arith.mulf %291, %285 : vector<1x256xf32>
    %293 = arith.addf %273, %292 : vector<1x256xf32>
    %c0_102 = arith.constant 0 : index
    %c160 = arith.constant 160 : index
    %294 = vector.load %arg6[%c0_102, %c160] : memref<2x435xf32, #tpu.memory_space<vmem>>, vector<1x256xf32>
    %c1_103 = arith.constant 1 : index
    %c160_104 = arith.constant 160 : index
    %295 = vector.load %arg6[%c1_103, %c160_104] : memref<2x435xf32, #tpu.memory_space<vmem>>, vector<1x256xf32>
    %c38 = arith.constant 38 : index
    %296 = memref.load %arg1[%c38] : memref<98xf32, #tpu.memory_space<smem>>
    %c87 = arith.constant 87 : index
    %297 = memref.load %arg1[%c87] : memref<98xf32, #tpu.memory_space<smem>>
    %298 = vector.broadcast %296 : f32 to vector<1x256xf32>
    %299 = arith.mulf %298, %294 : vector<1x256xf32>
    %300 = arith.addf %280, %299 : vector<1x256xf32>
    %301 = vector.broadcast %297 : f32 to vector<1x256xf32>
    %302 = arith.mulf %301, %295 : vector<1x256xf32>
    %303 = arith.addf %283, %302 : vector<1x256xf32>
    %c0_105 = arith.constant 0 : index
    %c176 = arith.constant 176 : index
    %304 = vector.load %arg6[%c0_105, %c176] : memref<2x435xf32, #tpu.memory_space<vmem>>, vector<1x256xf32>
    %c1_106 = arith.constant 1 : index
    %c176_107 = arith.constant 176 : index
    %305 = vector.load %arg6[%c1_106, %c176_107] : memref<2x435xf32, #tpu.memory_space<vmem>>, vector<1x256xf32>
    %c45 = arith.constant 45 : index
    %306 = memref.load %arg1[%c45] : memref<98xf32, #tpu.memory_space<smem>>
    %c94_108 = arith.constant 94 : index
    %307 = memref.load %arg1[%c94_108] : memref<98xf32, #tpu.memory_space<smem>>
    %308 = vector.broadcast %306 : f32 to vector<1x256xf32>
    %309 = arith.mulf %308, %304 : vector<1x256xf32>
    %310 = arith.addf %290, %309 : vector<1x256xf32>
    %311 = vector.broadcast %307 : f32 to vector<1x256xf32>
    %312 = arith.mulf %311, %305 : vector<1x256xf32>
    %313 = arith.addf %293, %312 : vector<1x256xf32>
    %c3_109 = arith.constant 3 : index
    %c0_110 = arith.constant 0 : index
    %314 = vector.load %arg3[%c3_109, %c0_110] : memref<7x256xf32, #tpu.memory_space<vmem>>, vector<1x256xf32>
    %315 = arith.addf %310, %300 : vector<1x256xf32>
    %316 = arith.mulf %314, %315 : vector<1x256xf32>
    %317 = arith.addf %240, %316 : vector<1x256xf32>
    %318 = arith.addf %313, %303 : vector<1x256xf32>
    %319 = arith.mulf %314, %318 : vector<1x256xf32>
    %320 = arith.addf %243, %319 : vector<1x256xf32>
    %c0_111 = arith.constant 0 : index
    %c81 = arith.constant 81 : index
    %321 = vector.load %arg6[%c0_111, %c81] : memref<2x435xf32, #tpu.memory_space<vmem>>, vector<1x256xf32>
    %c1_112 = arith.constant 1 : index
    %c81_113 = arith.constant 81 : index
    %322 = vector.load %arg6[%c1_112, %c81_113] : memref<2x435xf32, #tpu.memory_space<vmem>>, vector<1x256xf32>
    %c4 = arith.constant 4 : index
    %323 = memref.load %arg1[%c4] : memref<98xf32, #tpu.memory_space<smem>>
    %c53 = arith.constant 53 : index
    %324 = memref.load %arg1[%c53] : memref<98xf32, #tpu.memory_space<smem>>
    %325 = vector.broadcast %323 : f32 to vector<1x256xf32>
    %326 = arith.mulf %325, %321 : vector<1x256xf32>
    %327 = arith.addf %12, %326 : vector<1x256xf32>
    %328 = vector.broadcast %324 : f32 to vector<1x256xf32>
    %329 = arith.mulf %328, %322 : vector<1x256xf32>
    %330 = arith.addf %12, %329 : vector<1x256xf32>
    %c0_114 = arith.constant 0 : index
    %c97 = arith.constant 97 : index
    %331 = vector.load %arg6[%c0_114, %c97] : memref<2x435xf32, #tpu.memory_space<vmem>>, vector<1x256xf32>
    %c1_115 = arith.constant 1 : index
    %c97_116 = arith.constant 97 : index
    %332 = vector.load %arg6[%c1_115, %c97_116] : memref<2x435xf32, #tpu.memory_space<vmem>>, vector<1x256xf32>
    %c11 = arith.constant 11 : index
    %333 = memref.load %arg1[%c11] : memref<98xf32, #tpu.memory_space<smem>>
    %c60 = arith.constant 60 : index
    %334 = memref.load %arg1[%c60] : memref<98xf32, #tpu.memory_space<smem>>
    %335 = vector.broadcast %333 : f32 to vector<1x256xf32>
    %336 = arith.mulf %335, %331 : vector<1x256xf32>
    %337 = arith.addf %12, %336 : vector<1x256xf32>
    %338 = vector.broadcast %334 : f32 to vector<1x256xf32>
    %339 = arith.mulf %338, %332 : vector<1x256xf32>
    %340 = arith.addf %12, %339 : vector<1x256xf32>
    %c0_117 = arith.constant 0 : index
    %c113 = arith.constant 113 : index
    %341 = vector.load %arg6[%c0_117, %c113] : memref<2x435xf32, #tpu.memory_space<vmem>>, vector<1x256xf32>
    %c1_118 = arith.constant 1 : index
    %c113_119 = arith.constant 113 : index
    %342 = vector.load %arg6[%c1_118, %c113_119] : memref<2x435xf32, #tpu.memory_space<vmem>>, vector<1x256xf32>
    %c18 = arith.constant 18 : index
    %343 = memref.load %arg1[%c18] : memref<98xf32, #tpu.memory_space<smem>>
    %c67 = arith.constant 67 : index
    %344 = memref.load %arg1[%c67] : memref<98xf32, #tpu.memory_space<smem>>
    %345 = vector.broadcast %343 : f32 to vector<1x256xf32>
    %346 = arith.mulf %345, %341 : vector<1x256xf32>
    %347 = arith.addf %327, %346 : vector<1x256xf32>
    %348 = vector.broadcast %344 : f32 to vector<1x256xf32>
    %349 = arith.mulf %348, %342 : vector<1x256xf32>
    %350 = arith.addf %330, %349 : vector<1x256xf32>
    %c0_120 = arith.constant 0 : index
    %c129 = arith.constant 129 : index
    %351 = vector.load %arg6[%c0_120, %c129] : memref<2x435xf32, #tpu.memory_space<vmem>>, vector<1x256xf32>
    %c1_121 = arith.constant 1 : index
    %c129_122 = arith.constant 129 : index
    %352 = vector.load %arg6[%c1_121, %c129_122] : memref<2x435xf32, #tpu.memory_space<vmem>>, vector<1x256xf32>
    %c25 = arith.constant 25 : index
    %353 = memref.load %arg1[%c25] : memref<98xf32, #tpu.memory_space<smem>>
    %c74 = arith.constant 74 : index
    %354 = memref.load %arg1[%c74] : memref<98xf32, #tpu.memory_space<smem>>
    %355 = vector.broadcast %353 : f32 to vector<1x256xf32>
    %356 = arith.mulf %355, %351 : vector<1x256xf32>
    %357 = arith.addf %337, %356 : vector<1x256xf32>
    %358 = vector.broadcast %354 : f32 to vector<1x256xf32>
    %359 = arith.mulf %358, %352 : vector<1x256xf32>
    %360 = arith.addf %340, %359 : vector<1x256xf32>
    %c0_123 = arith.constant 0 : index
    %c145 = arith.constant 145 : index
    %361 = vector.load %arg6[%c0_123, %c145] : memref<2x435xf32, #tpu.memory_space<vmem>>, vector<1x256xf32>
    %c1_124 = arith.constant 1 : index
    %c145_125 = arith.constant 145 : index
    %362 = vector.load %arg6[%c1_124, %c145_125] : memref<2x435xf32, #tpu.memory_space<vmem>>, vector<1x256xf32>
    %c32 = arith.constant 32 : index
    %363 = memref.load %arg1[%c32] : memref<98xf32, #tpu.memory_space<smem>>
    %c81_126 = arith.constant 81 : index
    %364 = memref.load %arg1[%c81_126] : memref<98xf32, #tpu.memory_space<smem>>
    %365 = vector.broadcast %363 : f32 to vector<1x256xf32>
    %366 = arith.mulf %365, %361 : vector<1x256xf32>
    %367 = arith.addf %347, %366 : vector<1x256xf32>
    %368 = vector.broadcast %364 : f32 to vector<1x256xf32>
    %369 = arith.mulf %368, %362 : vector<1x256xf32>
    %370 = arith.addf %350, %369 : vector<1x256xf32>
    %c0_127 = arith.constant 0 : index
    %c161 = arith.constant 161 : index
    %371 = vector.load %arg6[%c0_127, %c161] : memref<2x435xf32, #tpu.memory_space<vmem>>, vector<1x256xf32>
    %c1_128 = arith.constant 1 : index
    %c161_129 = arith.constant 161 : index
    %372 = vector.load %arg6[%c1_128, %c161_129] : memref<2x435xf32, #tpu.memory_space<vmem>>, vector<1x256xf32>
    %c39 = arith.constant 39 : index
    %373 = memref.load %arg1[%c39] : memref<98xf32, #tpu.memory_space<smem>>
    %c88 = arith.constant 88 : index
    %374 = memref.load %arg1[%c88] : memref<98xf32, #tpu.memory_space<smem>>
    %375 = vector.broadcast %373 : f32 to vector<1x256xf32>
    %376 = arith.mulf %375, %371 : vector<1x256xf32>
    %377 = arith.addf %357, %376 : vector<1x256xf32>
    %378 = vector.broadcast %374 : f32 to vector<1x256xf32>
    %379 = arith.mulf %378, %372 : vector<1x256xf32>
    %380 = arith.addf %360, %379 : vector<1x256xf32>
    %c0_130 = arith.constant 0 : index
    %c177 = arith.constant 177 : index
    %381 = vector.load %arg6[%c0_130, %c177] : memref<2x435xf32, #tpu.memory_space<vmem>>, vector<1x256xf32>
    %c1_131 = arith.constant 1 : index
    %c177_132 = arith.constant 177 : index
    %382 = vector.load %arg6[%c1_131, %c177_132] : memref<2x435xf32, #tpu.memory_space<vmem>>, vector<1x256xf32>
    %c46 = arith.constant 46 : index
    %383 = memref.load %arg1[%c46] : memref<98xf32, #tpu.memory_space<smem>>
    %c95_133 = arith.constant 95 : index
    %384 = memref.load %arg1[%c95_133] : memref<98xf32, #tpu.memory_space<smem>>
    %385 = vector.broadcast %383 : f32 to vector<1x256xf32>
    %386 = arith.mulf %385, %381 : vector<1x256xf32>
    %387 = arith.addf %367, %386 : vector<1x256xf32>
    %388 = vector.broadcast %384 : f32 to vector<1x256xf32>
    %389 = arith.mulf %388, %382 : vector<1x256xf32>
    %390 = arith.addf %370, %389 : vector<1x256xf32>
    %c4_134 = arith.constant 4 : index
    %c0_135 = arith.constant 0 : index
    %391 = vector.load %arg3[%c4_134, %c0_135] : memref<7x256xf32, #tpu.memory_space<vmem>>, vector<1x256xf32>
    %392 = arith.addf %387, %377 : vector<1x256xf32>
    %393 = arith.mulf %391, %392 : vector<1x256xf32>
    %394 = arith.addf %317, %393 : vector<1x256xf32>
    %395 = arith.addf %390, %380 : vector<1x256xf32>
    %396 = arith.mulf %391, %395 : vector<1x256xf32>
    %397 = arith.addf %320, %396 : vector<1x256xf32>
    %c0_136 = arith.constant 0 : index
    %c82 = arith.constant 82 : index
    %398 = vector.load %arg6[%c0_136, %c82] : memref<2x435xf32, #tpu.memory_space<vmem>>, vector<1x256xf32>
    %c1_137 = arith.constant 1 : index
    %c82_138 = arith.constant 82 : index
    %399 = vector.load %arg6[%c1_137, %c82_138] : memref<2x435xf32, #tpu.memory_space<vmem>>, vector<1x256xf32>
    %c5 = arith.constant 5 : index
    %400 = memref.load %arg1[%c5] : memref<98xf32, #tpu.memory_space<smem>>
    %c54 = arith.constant 54 : index
    %401 = memref.load %arg1[%c54] : memref<98xf32, #tpu.memory_space<smem>>
    %402 = vector.broadcast %400 : f32 to vector<1x256xf32>
    %403 = arith.mulf %402, %398 : vector<1x256xf32>
    %404 = arith.addf %12, %403 : vector<1x256xf32>
    %405 = vector.broadcast %401 : f32 to vector<1x256xf32>
    %406 = arith.mulf %405, %399 : vector<1x256xf32>
    %407 = arith.addf %12, %406 : vector<1x256xf32>
    %c0_139 = arith.constant 0 : index
    %c98 = arith.constant 98 : index
    %408 = vector.load %arg6[%c0_139, %c98] : memref<2x435xf32, #tpu.memory_space<vmem>>, vector<1x256xf32>
    %c1_140 = arith.constant 1 : index
    %c98_141 = arith.constant 98 : index
    %409 = vector.load %arg6[%c1_140, %c98_141] : memref<2x435xf32, #tpu.memory_space<vmem>>, vector<1x256xf32>
    %c12 = arith.constant 12 : index
    %410 = memref.load %arg1[%c12] : memref<98xf32, #tpu.memory_space<smem>>
    %c61 = arith.constant 61 : index
    %411 = memref.load %arg1[%c61] : memref<98xf32, #tpu.memory_space<smem>>
    %412 = vector.broadcast %410 : f32 to vector<1x256xf32>
    %413 = arith.mulf %412, %408 : vector<1x256xf32>
    %414 = arith.addf %12, %413 : vector<1x256xf32>
    %415 = vector.broadcast %411 : f32 to vector<1x256xf32>
    %416 = arith.mulf %415, %409 : vector<1x256xf32>
    %417 = arith.addf %12, %416 : vector<1x256xf32>
    %c0_142 = arith.constant 0 : index
    %c114 = arith.constant 114 : index
    %418 = vector.load %arg6[%c0_142, %c114] : memref<2x435xf32, #tpu.memory_space<vmem>>, vector<1x256xf32>
    %c1_143 = arith.constant 1 : index
    %c114_144 = arith.constant 114 : index
    %419 = vector.load %arg6[%c1_143, %c114_144] : memref<2x435xf32, #tpu.memory_space<vmem>>, vector<1x256xf32>
    %c19 = arith.constant 19 : index
    %420 = memref.load %arg1[%c19] : memref<98xf32, #tpu.memory_space<smem>>
    %c68 = arith.constant 68 : index
    %421 = memref.load %arg1[%c68] : memref<98xf32, #tpu.memory_space<smem>>
    %422 = vector.broadcast %420 : f32 to vector<1x256xf32>
    %423 = arith.mulf %422, %418 : vector<1x256xf32>
    %424 = arith.addf %404, %423 : vector<1x256xf32>
    %425 = vector.broadcast %421 : f32 to vector<1x256xf32>
    %426 = arith.mulf %425, %419 : vector<1x256xf32>
    %427 = arith.addf %407, %426 : vector<1x256xf32>
    %c0_145 = arith.constant 0 : index
    %c130 = arith.constant 130 : index
    %428 = vector.load %arg6[%c0_145, %c130] : memref<2x435xf32, #tpu.memory_space<vmem>>, vector<1x256xf32>
    %c1_146 = arith.constant 1 : index
    %c130_147 = arith.constant 130 : index
    %429 = vector.load %arg6[%c1_146, %c130_147] : memref<2x435xf32, #tpu.memory_space<vmem>>, vector<1x256xf32>
    %c26 = arith.constant 26 : index
    %430 = memref.load %arg1[%c26] : memref<98xf32, #tpu.memory_space<smem>>
    %c75 = arith.constant 75 : index
    %431 = memref.load %arg1[%c75] : memref<98xf32, #tpu.memory_space<smem>>
    %432 = vector.broadcast %430 : f32 to vector<1x256xf32>
    %433 = arith.mulf %432, %428 : vector<1x256xf32>
    %434 = arith.addf %414, %433 : vector<1x256xf32>
    %435 = vector.broadcast %431 : f32 to vector<1x256xf32>
    %436 = arith.mulf %435, %429 : vector<1x256xf32>
    %437 = arith.addf %417, %436 : vector<1x256xf32>
    %c0_148 = arith.constant 0 : index
    %c146 = arith.constant 146 : index
    %438 = vector.load %arg6[%c0_148, %c146] : memref<2x435xf32, #tpu.memory_space<vmem>>, vector<1x256xf32>
    %c1_149 = arith.constant 1 : index
    %c146_150 = arith.constant 146 : index
    %439 = vector.load %arg6[%c1_149, %c146_150] : memref<2x435xf32, #tpu.memory_space<vmem>>, vector<1x256xf32>
    %c33 = arith.constant 33 : index
    %440 = memref.load %arg1[%c33] : memref<98xf32, #tpu.memory_space<smem>>
    %c82_151 = arith.constant 82 : index
    %441 = memref.load %arg1[%c82_151] : memref<98xf32, #tpu.memory_space<smem>>
    %442 = vector.broadcast %440 : f32 to vector<1x256xf32>
    %443 = arith.mulf %442, %438 : vector<1x256xf32>
    %444 = arith.addf %424, %443 : vector<1x256xf32>
    %445 = vector.broadcast %441 : f32 to vector<1x256xf32>
    %446 = arith.mulf %445, %439 : vector<1x256xf32>
    %447 = arith.addf %427, %446 : vector<1x256xf32>
    %c0_152 = arith.constant 0 : index
    %c162 = arith.constant 162 : index
    %448 = vector.load %arg6[%c0_152, %c162] : memref<2x435xf32, #tpu.memory_space<vmem>>, vector<1x256xf32>
    %c1_153 = arith.constant 1 : index
    %c162_154 = arith.constant 162 : index
    %449 = vector.load %arg6[%c1_153, %c162_154] : memref<2x435xf32, #tpu.memory_space<vmem>>, vector<1x256xf32>
    %c40 = arith.constant 40 : index
    %450 = memref.load %arg1[%c40] : memref<98xf32, #tpu.memory_space<smem>>
    %c89 = arith.constant 89 : index
    %451 = memref.load %arg1[%c89] : memref<98xf32, #tpu.memory_space<smem>>
    %452 = vector.broadcast %450 : f32 to vector<1x256xf32>
    %453 = arith.mulf %452, %448 : vector<1x256xf32>
    %454 = arith.addf %434, %453 : vector<1x256xf32>
    %455 = vector.broadcast %451 : f32 to vector<1x256xf32>
    %456 = arith.mulf %455, %449 : vector<1x256xf32>
    %457 = arith.addf %437, %456 : vector<1x256xf32>
    %c0_155 = arith.constant 0 : index
    %c178 = arith.constant 178 : index
    %458 = vector.load %arg6[%c0_155, %c178] : memref<2x435xf32, #tpu.memory_space<vmem>>, vector<1x256xf32>
    %c1_156 = arith.constant 1 : index
    %c178_157 = arith.constant 178 : index
    %459 = vector.load %arg6[%c1_156, %c178_157] : memref<2x435xf32, #tpu.memory_space<vmem>>, vector<1x256xf32>
    %c47 = arith.constant 47 : index
    %460 = memref.load %arg1[%c47] : memref<98xf32, #tpu.memory_space<smem>>
    %c96_158 = arith.constant 96 : index
    %461 = memref.load %arg1[%c96_158] : memref<98xf32, #tpu.memory_space<smem>>
    %462 = vector.broadcast %460 : f32 to vector<1x256xf32>
    %463 = arith.mulf %462, %458 : vector<1x256xf32>
    %464 = arith.addf %444, %463 : vector<1x256xf32>
    %465 = vector.broadcast %461 : f32 to vector<1x256xf32>
    %466 = arith.mulf %465, %459 : vector<1x256xf32>
    %467 = arith.addf %447, %466 : vector<1x256xf32>
    %c5_159 = arith.constant 5 : index
    %c0_160 = arith.constant 0 : index
    %468 = vector.load %arg3[%c5_159, %c0_160] : memref<7x256xf32, #tpu.memory_space<vmem>>, vector<1x256xf32>
    %469 = arith.addf %464, %454 : vector<1x256xf32>
    %470 = arith.mulf %468, %469 : vector<1x256xf32>
    %471 = arith.addf %394, %470 : vector<1x256xf32>
    %472 = arith.addf %467, %457 : vector<1x256xf32>
    %473 = arith.mulf %468, %472 : vector<1x256xf32>
    %474 = arith.addf %397, %473 : vector<1x256xf32>
    %c0_161 = arith.constant 0 : index
    %c83 = arith.constant 83 : index
    %475 = vector.load %arg6[%c0_161, %c83] : memref<2x435xf32, #tpu.memory_space<vmem>>, vector<1x256xf32>
    %c1_162 = arith.constant 1 : index
    %c83_163 = arith.constant 83 : index
    %476 = vector.load %arg6[%c1_162, %c83_163] : memref<2x435xf32, #tpu.memory_space<vmem>>, vector<1x256xf32>
    %c6 = arith.constant 6 : index
    %477 = memref.load %arg1[%c6] : memref<98xf32, #tpu.memory_space<smem>>
    %c55 = arith.constant 55 : index
    %478 = memref.load %arg1[%c55] : memref<98xf32, #tpu.memory_space<smem>>
    %479 = vector.broadcast %477 : f32 to vector<1x256xf32>
    %480 = arith.mulf %479, %475 : vector<1x256xf32>
    %481 = arith.addf %12, %480 : vector<1x256xf32>
    %482 = vector.broadcast %478 : f32 to vector<1x256xf32>
    %483 = arith.mulf %482, %476 : vector<1x256xf32>
    %484 = arith.addf %12, %483 : vector<1x256xf32>
    %c0_164 = arith.constant 0 : index
    %c99 = arith.constant 99 : index
    %485 = vector.load %arg6[%c0_164, %c99] : memref<2x435xf32, #tpu.memory_space<vmem>>, vector<1x256xf32>
    %c1_165 = arith.constant 1 : index
    %c99_166 = arith.constant 99 : index
    %486 = vector.load %arg6[%c1_165, %c99_166] : memref<2x435xf32, #tpu.memory_space<vmem>>, vector<1x256xf32>
    %c13 = arith.constant 13 : index
    %487 = memref.load %arg1[%c13] : memref<98xf32, #tpu.memory_space<smem>>
    %c62 = arith.constant 62 : index
    %488 = memref.load %arg1[%c62] : memref<98xf32, #tpu.memory_space<smem>>
    %489 = vector.broadcast %487 : f32 to vector<1x256xf32>
    %490 = arith.mulf %489, %485 : vector<1x256xf32>
    %491 = arith.addf %12, %490 : vector<1x256xf32>
    %492 = vector.broadcast %488 : f32 to vector<1x256xf32>
    %493 = arith.mulf %492, %486 : vector<1x256xf32>
    %494 = arith.addf %12, %493 : vector<1x256xf32>
    %c0_167 = arith.constant 0 : index
    %c115 = arith.constant 115 : index
    %495 = vector.load %arg6[%c0_167, %c115] : memref<2x435xf32, #tpu.memory_space<vmem>>, vector<1x256xf32>
    %c1_168 = arith.constant 1 : index
    %c115_169 = arith.constant 115 : index
    %496 = vector.load %arg6[%c1_168, %c115_169] : memref<2x435xf32, #tpu.memory_space<vmem>>, vector<1x256xf32>
    %c20 = arith.constant 20 : index
    %497 = memref.load %arg1[%c20] : memref<98xf32, #tpu.memory_space<smem>>
    %c69 = arith.constant 69 : index
    %498 = memref.load %arg1[%c69] : memref<98xf32, #tpu.memory_space<smem>>
    %499 = vector.broadcast %497 : f32 to vector<1x256xf32>
    %500 = arith.mulf %499, %495 : vector<1x256xf32>
    %501 = arith.addf %481, %500 : vector<1x256xf32>
    %502 = vector.broadcast %498 : f32 to vector<1x256xf32>
    %503 = arith.mulf %502, %496 : vector<1x256xf32>
    %504 = arith.addf %484, %503 : vector<1x256xf32>
    %c0_170 = arith.constant 0 : index
    %c131 = arith.constant 131 : index
    %505 = vector.load %arg6[%c0_170, %c131] : memref<2x435xf32, #tpu.memory_space<vmem>>, vector<1x256xf32>
    %c1_171 = arith.constant 1 : index
    %c131_172 = arith.constant 131 : index
    %506 = vector.load %arg6[%c1_171, %c131_172] : memref<2x435xf32, #tpu.memory_space<vmem>>, vector<1x256xf32>
    %c27 = arith.constant 27 : index
    %507 = memref.load %arg1[%c27] : memref<98xf32, #tpu.memory_space<smem>>
    %c76 = arith.constant 76 : index
    %508 = memref.load %arg1[%c76] : memref<98xf32, #tpu.memory_space<smem>>
    %509 = vector.broadcast %507 : f32 to vector<1x256xf32>
    %510 = arith.mulf %509, %505 : vector<1x256xf32>
    %511 = arith.addf %491, %510 : vector<1x256xf32>
    %512 = vector.broadcast %508 : f32 to vector<1x256xf32>
    %513 = arith.mulf %512, %506 : vector<1x256xf32>
    %514 = arith.addf %494, %513 : vector<1x256xf32>
    %c0_173 = arith.constant 0 : index
    %c147 = arith.constant 147 : index
    %515 = vector.load %arg6[%c0_173, %c147] : memref<2x435xf32, #tpu.memory_space<vmem>>, vector<1x256xf32>
    %c1_174 = arith.constant 1 : index
    %c147_175 = arith.constant 147 : index
    %516 = vector.load %arg6[%c1_174, %c147_175] : memref<2x435xf32, #tpu.memory_space<vmem>>, vector<1x256xf32>
    %c34 = arith.constant 34 : index
    %517 = memref.load %arg1[%c34] : memref<98xf32, #tpu.memory_space<smem>>
    %c83_176 = arith.constant 83 : index
    %518 = memref.load %arg1[%c83_176] : memref<98xf32, #tpu.memory_space<smem>>
    %519 = vector.broadcast %517 : f32 to vector<1x256xf32>
    %520 = arith.mulf %519, %515 : vector<1x256xf32>
    %521 = arith.addf %501, %520 : vector<1x256xf32>
    %522 = vector.broadcast %518 : f32 to vector<1x256xf32>
    %523 = arith.mulf %522, %516 : vector<1x256xf32>
    %524 = arith.addf %504, %523 : vector<1x256xf32>
    %c0_177 = arith.constant 0 : index
    %c163 = arith.constant 163 : index
    %525 = vector.load %arg6[%c0_177, %c163] : memref<2x435xf32, #tpu.memory_space<vmem>>, vector<1x256xf32>
    %c1_178 = arith.constant 1 : index
    %c163_179 = arith.constant 163 : index
    %526 = vector.load %arg6[%c1_178, %c163_179] : memref<2x435xf32, #tpu.memory_space<vmem>>, vector<1x256xf32>
    %c41 = arith.constant 41 : index
    %527 = memref.load %arg1[%c41] : memref<98xf32, #tpu.memory_space<smem>>
    %c90 = arith.constant 90 : index
    %528 = memref.load %arg1[%c90] : memref<98xf32, #tpu.memory_space<smem>>
    %529 = vector.broadcast %527 : f32 to vector<1x256xf32>
    %530 = arith.mulf %529, %525 : vector<1x256xf32>
    %531 = arith.addf %511, %530 : vector<1x256xf32>
    %532 = vector.broadcast %528 : f32 to vector<1x256xf32>
    %533 = arith.mulf %532, %526 : vector<1x256xf32>
    %534 = arith.addf %514, %533 : vector<1x256xf32>
    %c0_180 = arith.constant 0 : index
    %c179 = arith.constant 179 : index
    %535 = vector.load %arg6[%c0_180, %c179] : memref<2x435xf32, #tpu.memory_space<vmem>>, vector<1x256xf32>
    %c1_181 = arith.constant 1 : index
    %c179_182 = arith.constant 179 : index
    %536 = vector.load %arg6[%c1_181, %c179_182] : memref<2x435xf32, #tpu.memory_space<vmem>>, vector<1x256xf32>
    %c48 = arith.constant 48 : index
    %537 = memref.load %arg1[%c48] : memref<98xf32, #tpu.memory_space<smem>>
    %c97_183 = arith.constant 97 : index
    %538 = memref.load %arg1[%c97_183] : memref<98xf32, #tpu.memory_space<smem>>
    %539 = vector.broadcast %537 : f32 to vector<1x256xf32>
    %540 = arith.mulf %539, %535 : vector<1x256xf32>
    %541 = arith.addf %521, %540 : vector<1x256xf32>
    %542 = vector.broadcast %538 : f32 to vector<1x256xf32>
    %543 = arith.mulf %542, %536 : vector<1x256xf32>
    %544 = arith.addf %524, %543 : vector<1x256xf32>
    %c6_184 = arith.constant 6 : index
    %c0_185 = arith.constant 0 : index
    %545 = vector.load %arg3[%c6_184, %c0_185] : memref<7x256xf32, #tpu.memory_space<vmem>>, vector<1x256xf32>
    %546 = arith.addf %541, %531 : vector<1x256xf32>
    %547 = arith.mulf %545, %546 : vector<1x256xf32>
    %548 = arith.addf %471, %547 : vector<1x256xf32>
    %549 = arith.addf %544, %534 : vector<1x256xf32>
    %550 = arith.mulf %545, %549 : vector<1x256xf32>
    %551 = arith.addf %474, %550 : vector<1x256xf32>
    %552 = arith.addf %548, %551 : vector<1x256xf32>
    %c0_186 = arith.constant 0 : index
    %553 = memref.load %arg2[%c0_186] : memref<1xf32, #tpu.memory_space<smem>>
    %554 = vector.broadcast %553 : f32 to vector<1x256xf32>
    %555 = arith.addf %552, %554 : vector<1x256xf32>
    %556 = arith.negf %555 : vector<1x256xf32>
    %557 = math.exp %556 : vector<1x256xf32>
    %cst_187 = arith.constant 1.000000e+00 : f32
    %558 = vector.broadcast %cst_187 : f32 to vector<1x256xf32>
    %559 = arith.addf %558, %557 : vector<1x256xf32>
    %560 = arith.divf %558, %559 : vector<1x256xf32>
    %c0_188 = arith.constant 0 : index
    %c0_189 = arith.constant 0 : index
    %c0_190 = arith.constant 0 : index
    %561 = vector.load %arg4[%c0_188, %c0_189, %c0_190] : memref<1x4x256xf32, #tpu.memory_space<vmem>>, vector<1x4x256xf32>
    %562 = vector.shape_cast %561 : vector<1x4x256xf32> to vector<4x256xf32>
    %563 = vector.broadcast %560 : vector<1x256xf32> to vector<4x256xf32>
    %564 = arith.mulf %563, %562 : vector<4x256xf32>
    %c0_191 = arith.constant 0 : index
    %c0_192 = arith.constant 0 : index
    %c0_193 = arith.constant 0 : index
    %565 = vector.load %arg5[%c0_191, %c0_192, %c0_193] : memref<1x4x256xf32, #tpu.memory_space<vmem>>, vector<1x4x256xf32>
    %566 = vector.shape_cast %565 : vector<1x4x256xf32> to vector<4x256xf32>
    %567 = vector.shape_cast %564 : vector<4x256xf32> to vector<1x4x256xf32>
    tpu.vector_store %arg5[%c0_191, %c0_192, %c0_193], %567 {strides = array<i32>} : memref<1x4x256xf32, #tpu.memory_space<vmem>>, vector<1x4x256xf32>,
    return
  }
  func.func @transform_0(%arg0: i32) -> i32 {
    %c0_i32 = arith.constant 0 : i32
    %c0_i32_0 = arith.constant 0 : i32
    return %c0_i32 : i32
  }
  func.func @transform_1(%arg0: i32) -> i32 {
    %c0_i32 = arith.constant 0 : i32
    %c0_i32_0 = arith.constant 0 : i32
    return %c0_i32 : i32
  }
  func.func @transform_2(%arg0: i32) -> (i32, i32) {
    %c0_i32 = arith.constant 0 : i32
    %c0_i32_0 = arith.constant 0 : i32
    %c0_i32_1 = arith.constant 0 : i32
    return %c0_i32, %c0_i32_0 : i32, i32
  }
  func.func @transform_3(%arg0: i32) -> (i32, i32, i32) {
    %c0_i32 = arith.constant 0 : i32
    %c0_i32_0 = arith.constant 0 : i32
    %c0_i32_1 = arith.constant 0 : i32
    return %arg0, %c0_i32, %c0_i32_0 : i32, i32, i32
  }
  func.func @transform_4(%arg0: i32) -> (i32, i32, i32) {
    %c0_i32 = arith.constant 0 : i32
    %c0_i32_0 = arith.constant 0 : i32
    %c0_i32_1 = arith.constant 0 : i32
    return %arg0, %c0_i32, %c0_i32_0 : i32, i32, i32
  }
}

</mosaic_0001>

<bundles_post_ra>
// kernel: spatial_attention.1
= control target key start
LH: loop header
LB: loop body
LE: loop exit
PB: predicated region body
PF: predicated region fallthrough
CT: control target
= control target key end

     0   :  { %s2289_s0 = inlined_call_operand.vmem [shape: f32[98], index: 0, kind: input, shape index: {}]   ;;  %s2290_s1 = inlined_call_operand.<no memory space> [shape: f32[1], index: 1, kind: input, shape index: {}]   ;;  %s2291_s2 = inlined_call_operand.vmem [shape: f32[7,256], index: 2, kind: input, shape index: {}]   ;;  %s2292_s3 = inlined_call_operand.vmem [shape: f32[2,4,256], index: 3, kind: input, shape index: {}]   ;;  %s2293_s4 = inlined_call_operand.vmem [shape: f32[2,4,256], index: 4, kind: output, shape index: {}]  }
   0x1   :  { %9 = sst [smem:[#allocation3]] %s2290_s1 }
   0x2   :  { %10 = vsyncpa [#allocation5], 0  ;;  %s1680_s17 = smov 0  }
   0x3 LB: > { %s1686_s18 = sadd.s32 4294967295, %s1636_s17   ;;  %p1454_p0 = scmp.ge.s32.totalorder %s1636_s17, 1  ;;  %s1636_s17 = sphi %s1680_s17, %s16_s17  }
   0x4   : > { %p136_p1 = scmp.lt.s32.totalorder %s1636_s17, 3  ;;  %s149_s1 = sshll.u32 %s2289_s0, 4  ;;  %s150_s1 = int_to_ptr.vmem [resolvable:$true] %s149_s1 }
   0x5   : > { %p1579_p3 = scmp.eq.s32.totalorder %s1686_s18, 0  ;;  %s1611_s22 = scalar_lea.vmem %s150_s1, 16 }
   0x6   : > { %p1693_p2 = pnand %p1454_p0, %p136_p1  ;;  %p1612_p6 = scmp.ne.s32.totalorder %s150_s1, %s1611_s22 }
   0x7   : > { %p1619_p10 = scmp.lt.s32.totalorder %s150_s1, %s150_s1  ;;  %p1620_p11 = scmp.lt.s32.totalorder %s1611_s22, %s1611_s22 }
   0x8   : > { %p1575_p4 = pneg %p1693_p2 }
   0x9   : > { %p1621_p12 = por %p1620_p11, %p1619_p10 }
   0xa   : > { %p1576_p5 = pnand %p1579_p3, %p1575_p4 }
   0xc   : > { %p1613_p7 = pneg %p1576_p5 }
   0xe   : > { %p1614_p8 = pnand %p1613_p7, %p1612_p6 }
  0x10   : > { %p1615_p9 = pneg %p1614_p8 }
  0x12   : > { %p1622_p13 = pnand %p1621_p12, %p1615_p9 }
  0x14   : > { %1625 = shalt.err (!%p1622_p13)
}
  0x15   : > { %s1638_s23 = smov [#allocation4]   ;;  %176 = sbr.rel (%p1693_p2) target bundleno = 533 (0x215), region = 36 }
  0x16   : > { %1578 = dma.vmem_to_smem (!%p1576_p5), %s150_s1, 16, %s1638_s23, [#allocation5]  }
  0x1c   : > { %1631 = dma.done.wait (%p1579_p3), [#allocation5], 16  }
  0x1d   : > { %1633 = vsyncadd (%p1579_p3), [#allocation5], 4294967280 }
  0x1e   : > { %182 = sfence }
  0x1f   : > { %p203_p0 = scmp.lt.s32.totalorder %s1686_s18, 1  ;;  %vm248_vm0 = vcmask 1041408   ;;  %vm249_vm1 = vcmask 1043458   ;;  %vm251_vm2 = vcmask 1045508   ;;  %vm253_vm4 = vcmask 416774   ;;  %s1468_s28 = sld [smem:[#allocation4 + $0x15]] }
  0x20   : > { %vm250_vm3 = vmor %vm249_vm1, %vm248_vm0  ;;  %vm217_vm7 = vcmask 1043456   ;;  %v1639_v0 = vmov 0.0   ;;  %v262_v12 = vlaneseq  ;;  %v1640_v16 = vmov 1966171168   ;;  %s1482_s29 = sld [smem:[#allocation4 + $0x16]]  ;;  %s1472_s30 = sld [smem:[#allocation4 + $0x23]] }
  0x21   : > { %s2296_s18 = smov (!%p203_p0, %s1686_s18), 1  ;;  %vm252_vm5 = vmor %vm251_vm2, %vm250_vm3  ;;  %v260_v17 = vunpack.c.l.s4 %v1640_v16  ;;  %s1483_s5 = sld [smem:[#allocation4 + $0x47]]  ;;  %vm327_vm9 = vcmask 785408   ;;  %vm370_vm10 = vcmask 523264   ;;  %vm411_vm11 = vcmask 261120  }
  0x22   : > { %vm254_vm6 = vmor %vm253_vm4, %vm252_vm5  ;;  %s1569_s24 = sshll.u32 %s2296_s18, 3  ;;  %v1721_v23 = vshrl.u32 %v262_v12, 7  ;;  %vm276_vm8 = vcmp.lt.s32.totalorder %v262_v12, 256  ;;  %s1486_s6 = sld [smem:[#allocation4 + $0x24]]  ;;  %vm429_vm12 = vcmask 916480   ;;  %vm586_vm13 = vcmask 408576  }
  0x23   : > { %255 = vst.msk [vmem:[#allocation2] sm:$0xff] %vm254_vm6, %v1639_v0  ;;  %s1718_s27 = scalar_lea.vmem %s2292_s3, %s1569_s24  ;;  %v261_v27 = vunpack.c.0.s8 %v260_v17  ;;  %s1473_s7 = sld [smem:[#allocation4 + $0x54]]  ;;  %vm437_vm14 = vcmask 416768   ;;  %vm735_vm15 = vcmask 400384   ;;  %vm886_vm0 = vcmask 392192  }
  0x24   : > { %v213_v1 = vld [vmem:[%s1718_s27] sm:$0xff]  ;;  %s1724_s8 = sld [smem:[#allocation4 + $0x17]]  ;;  %s1487_s9 = sld [smem:[#allocation4 + $0x55]]  ;;  %vm1035_vm1 = vcmask 384000   ;;  %vm1184_vm2 = vcmask 375808   ;;  %vm1333_vm3 = vcmask 367616  }
  0x25   : > { %v215_v2 = vcombine.high %v213_v1, %v213_v1  ;;  %v218_v3 = vsel %vm217_vm7, %v213_v1, -inf  ;;  %v232_v4 = vsel %vm217_vm7, %v213_v1, 0.0  ;;  %v264_v35 = vsub.s32 %v261_v27, %v1721_v23  ;;  %s1641_s10 = smov 96   ;;  %s1501_s11 = sld [smem:[#allocation4 + $0x25]] }
  0x26   : > { %v219_v5 = vrot.slane %v218_v3, 4  ;;  %v233_v6 = vrot.slane %v232_v4, 4  ;;  %v342_v45 = vstv %s1468_s28  ;;  %v495_v46 = vstv %s1482_s29  ;;  %s1498_s12 = sld [smem:[#allocation4 + $0x48]]  ;;  %s1642_s13 = smov 64  }
  0x27   : > { %v225_v7 = vsel %vm217_vm7, %v215_v2, -inf  ;;  %v239_v8 = vsel %vm217_vm7, %v215_v2, 0.0  ;;  %v385_v49 = vstv %s1472_s30  ;;  %v504_v52 = vstv %s1483_s5  ;;  %s1512_s14 = sld [smem:[#allocation4 + $0x18]]  ;;  %s1502_s15 = sld [smem:[#allocation4 + $0x56]] }
  0x28   : > { %v220_v9 = vmax.f32 %v218_v3, %v219_v5  ;;  %v226_v10 = vrot.slane %v225_v7, 4  ;;  %v234_v11 = vadd.f32 %v233_v6, %v232_v4  ;;  %v240_v13 = vrot.slane %v239_v8, 4  ;;  %s1516_s16 = sld [smem:[#allocation4 + $0x26]]  ;;  %s1513_s19 = sld [smem:[#allocation4 + $0x49]] }
  0x29   : > { %v535_v56 = vstv %s1486_s6  ;;  %v394_v58 = vstv %s1473_s7  ;;  %s1527_s20 = sld [smem:[#allocation4 + $0x19]]  ;;  %s1517_s1 = sld [smem:[#allocation4 + $0x57]] }
  0x2a   : > { %v221_v14 = vrot.slane %v220_v9, 2  ;;  %v227_v15 = vmax.f32 %v225_v7, %v226_v10  ;;  %v235_v18 = vrot.slane %v234_v11, 2  ;;  %v241_v19 = vadd.f32 %v240_v13, %v239_v8  ;;  %s1531_s21 = sld [smem:[#allocation4 + $0x27]]  ;;  %s1528_s22 = sld [smem:[#allocation4 + $0x4a]] }
  0x2b   : > { %v644_v61 = vstv %s1724_s8  ;;  %v544_v62 = vstv %s1487_s9  ;;  %v684_v1 = vstv %s1501_s11  ;;  %s1542_s23 = sld [smem:[#allocation4 + $0x1a]]  ;;  %s1532_s25 = sld [smem:[#allocation4 + $0x58]] }
  0x2c   : > { %v222_v20 = vmax.f32 %v220_v9, %v221_v14  ;;  %v228_v21 = vrot.slane %v227_v15, 2  ;;  %v236_v22 = vadd.f32 %v235_v18, %v234_v11  ;;  %v242_v24 = vrot.slane %v241_v19, 2  ;;  %s1469_s26 = sld [smem:[#allocation4 + $0x46]]  ;;  %s1543_s28 = sld [smem:[#allocation4 + $0x4b]] }
  0x2d   : > { %v653_v2 = vstv %s1498_s12  ;;  %v795_v6 = vstv %s1512_s14  ;;  %v693_v7 = vstv %s1502_s15  ;;  %s1546_s29 = sld [smem:[#allocation4 + $0x28]]  ;;  %s1547_s30 = sld [smem:[#allocation4 + $0x59]] }
  0x2e   : > { %v223_v25 = vrot.slane %v222_v20, 1  ;;  %v229_v26 = vmax.f32 %v227_v15, %v228_v21  ;;  %v237_v28 = vrot.slane %v236_v22, 1  ;;  %v243_v29 = vadd.f32 %v242_v24, %v241_v19  ;;  %s1557_s5 = sld [smem:[#allocation4 + $0x1b]]  ;;  %s1558_s6 = sld [smem:[#allocation4 + $0x4c]] }
  0x2f   : > { %v835_v10 = vstv %s1516_s16  ;;  %v804_v12 = vstv %s1513_s19  ;;  %v944_v15 = vstv %s1527_s20  ;;  %v844_v16 = vstv %s1517_s1  ;;  %s1561_s7 = sld [smem:[#allocation4 + $0x29]]  ;;  %s1562_s8 = sld [smem:[#allocation4 + $0x5a]] }
  0x30   : > { %v224_v30 = vmax.f32 %v222_v20, %v223_v25  ;;  %v230_v31 = vrot.slane %v229_v26, 1  ;;  %v238_v32 = vadd.f32 %v237_v28, %v236_v22  ;;  %v244_v33 = vrot.slane %v243_v29, 1  ;;  %s1466_s9 = sld [smem:[#allocation4 + $0xe]]  ;;  %s1467_s11 = sld [smem:[#allocation4 + $0x3f]] }
  0x31   : > { %v984_v19 = vstv %s1531_s21  ;;  %v953_v20 = vstv %s1528_s22  ;;  %v1093_v24 = vstv %s1542_s23  ;;  %v993_v25 = vstv %s1532_s25  ;;  %s1480_s12 = sld [smem:[#allocation4 + $0xf]]  ;;  %s1481_s14 = sld [smem:[#allocation4 + $0x40]] }
  0x32   : > { %v231_v34 = vmax.f32 %v229_v26, %v230_v31  ;;  %v245_v36 = vadd.f32 %v244_v33, %v243_v29  ;;  %v246_v37 = vmul.f32 0.25, %v238_v32  ;;  %v351_v28 = vstv %s1469_s26  ;;  %s1470_s15 = sld [smem:[#allocation4 + $0x1c]]  ;;  %s1471_s16 = sld [smem:[#allocation4 + $0x4d]] }
  0x33   : > { %v1102_v29 = vstv %s1543_s28  ;;  %v1133_v32 = vstv %s1546_s29  ;;  %v1142_v33 = vstv %s1547_s30  ;;  %s1484_s19 = sld [smem:[#allocation4 + $0x1d]]  ;;  %s1485_s20 = sld [smem:[#allocation4 + $0x4e]] }
  0x34   : > { %v258_v38 = vcombine.low %v224_v30, %v231_v34  ;;  %v247_v39 = vmul.f32 0.25, %v245_v36  ;;  %v1242_v36 = vstv %s1557_s5  ;;  %s1495_s1 = sld [smem:[#allocation4 + $0x10]]  ;;  %s1496_s21 = sld [smem:[#allocation4 + $0x41]] }
  0x35   : > { %s1474_s22 = sld [smem:[#allocation4 + $0x2a]]  ;;  %s1475_s23 = sld [smem:[#allocation4 + $0x5b]] }
  0x36   : > { %v265_v40 = vrot.slane %v258_v38, %v264_v35  ;;  %v282_v41 = vcombine.low %v246_v37, %v247_v39  ;;  %v1251_v37 = vstv %s1558_s6  ;;  %s1488_s25 = sld [smem:[#allocation4 + $0x2b]]  ;;  %s1489_s26 = sld [smem:[#allocation4 + $0x5c]] }
  0x37   : > { %s1499_s28 = sld [smem:[#allocation4 + $0x1e]]  ;;  %s1500_s29 = sld [smem:[#allocation4 + $0x4f]] }
  0x38   : > { %v272_v42 = vrot.slane %v265_v40, %v264_v35  ;;  %v289_v43 = vrot.slane %v282_v41, %v264_v35  ;;  %v1282_v40 = vstv %s1561_s7  ;;  %v1291_v41 = vstv %s1562_s8  ;;  %s1510_s30 = sld [smem:[#allocation4 + $0x11]]  ;;  %s1511_s5 = sld [smem:[#allocation4 + $0x42]] }
  0x39   : > { %s1643_s6 = smov 32   ;;  %s1503_s7 = sld [smem:[#allocation4 + $0x2c]] }
  0x3a   : > { %279 = vst.msk [vmem:[#allocation2 + $0x2] ss:$2 sm:$0x3] %vm276_vm8, %v272_v42  ;;  %v296_v44 = vrot.slane %v289_v43, %v264_v35  ;;  %s1504_s8 = sld [smem:[#allocation4 + $0x5d]] }
  0x3c   : > { %299 = vst.msk [vmem:[#allocation2 + $0x3] ss:$2 sm:$0x3] %vm276_vm8, %v296_v44  ;;  %v321_v44 = vstv %s1466_s9  ;;  %s1514_s9 = sld [smem:[#allocation4 + $0x1f]] }
  0x41   : > { %v1726_v47 = vld [vmem:[#allocation2] ss:$2 sm:$0x7] }
  0x42   : > { %v1728_v48 = vld [vmem:[#allocation2 + $0x2] ss:$2 sm:$0x7]  ;;  %v343_v50 = vmul.f32 %v342_v45, %v1726_v47  ;;  %v496_v51 = vmul.f32 %v495_v46, %v1726_v47  ;;  %v645_v63 = vmul.f32 %v644_v61, %v1726_v47  ;;  %v331_v45 = vstv %s1467_s11  ;;  %s1515_s11 = sld [smem:[#allocation4 + $0x50]] }
  0x43   : > { %v386_v53 = vmul.f32 %v385_v49, %v1728_v48  ;;  %v1735_v54 = vld [vmem:[#allocation2 + $0x1] ss:$2 sm:$0x7]  ;;  %v536_v59 = vmul.f32 %v535_v56, %v1728_v48  ;;  %v685_v3 = vmul.f32 %v684_v1, %v1728_v48  ;;  %v791_v5 = vld [vmem:[#allocation2 + $0x2] ss:$2 sm:$0x3]  ;;  %v836_v13 = vmul.f32 %v835_v10, %v1728_v48 }
  0x44   : > { %345 = vrot.lane.b32.xlu0 %v343_v50, %s1641_s10  ;;  %498 = vrot.lane.b32.xlu1 %v496_v51, %s1641_s10  ;;  %v505_v55 = vmul.f32 %v504_v52, %v1735_v54  ;;  %v1738_v57 = vld [vmem:[#allocation2 + $0x3] ss:$2 sm:$0x7]  ;;  %v654_v4 = vmul.f32 %v653_v2, %v1735_v54  ;;  %v796_v8 = vmul.f32 %v795_v6, %v791_v5  ;;  %v475_v50 = vstv %s1480_s12  ;;  %s1525_s12 = sld [smem:[#allocation4 + $0x12]] }
  0x45   : > { %v395_v60 = vmul.f32 %v394_v58, %v1738_v57  ;;  %v545_v0 = vmul.f32 %v544_v62, %v1738_v57  ;;  %v694_v9 = vmul.f32 %v693_v7, %v1738_v57  ;;  %v792_v11 = vld [vmem:[#allocation2 + $0x3] ss:$2 sm:$0x3]  ;;  %v945_v17 = vmul.f32 %v944_v15, %v1728_v48 }
  0x46   : > { %v805_v14 = vmul.f32 %v804_v12, %v792_v11  ;;  %v845_v18 = vmul.f32 %v844_v16, %v1738_v57  ;;  %v985_v21 = vmul.f32 %v984_v19, %v1728_v48  ;;  %v954_v22 = vmul.f32 %v953_v20, %v1738_v57 }
  0x47   : > { %v1094_v26 = vmul.f32 %v1093_v24, %v1728_v48  ;;  %v994_v27 = vmul.f32 %v993_v25, %v1738_v57  ;;  %v352_v30 = vmul.f32 %v351_v28, %v1735_v54  ;;  %v1103_v31 = vmul.f32 %v1102_v29, %v1738_v57 }
  0x48   : > { %388 = vrot.lane.b32.xlu0 %v386_v53, %s1642_s13  ;;  %507 = vrot.lane.b32.xlu1 %v505_v55, %s1641_s10  ;;  %v1134_v34 = vmul.f32 %v1133_v32, %v1728_v48  ;;  %v1143_v35 = vmul.f32 %v1142_v33, %v1738_v57  ;;  %v1243_v38 = vmul.f32 %v1242_v36, %v1728_v48  ;;  %v484_v51 = vstv %s1481_s14  ;;  %s1526_s14 = sld [smem:[#allocation4 + $0x43]] }
  0x49   : > { %v1252_v39 = vmul.f32 %v1251_v37, %v1738_v57  ;;  %v1283_v42 = vmul.f32 %v1282_v40, %v1728_v48  ;;  %v1292_v43 = vmul.f32 %v1291_v41, %v1738_v57  ;;  %v322_v46 = vmul.f32 %v321_v44, %v1726_v47 }
  0x4a   : > { %v332_v49 = vmul.f32 %v331_v45, %v1735_v54  ;;  %v476_v52 = vmul.f32 %v475_v50, %v1726_v47  ;;  %v485_v53 = vmul.f32 %v484_v51, %v1735_v54  ;;  %v364_v55 = vstv %s1470_s15  ;;  %s1518_s15 = sld [smem:[#allocation4 + $0x2d]] }
  0x4b   : > { %v374_v56 = vstv %s1471_s16  ;;  %v365_v58 = vmul.f32 %v364_v55, %v1728_v48  ;;  %v524_v61 = vstv %s1485_s20  ;;  %v633_v1 = vstv %s1496_s21  ;;  %s1519_s16 = sld [smem:[#allocation4 + $0x5e]]  ;;  %s1530_s20 = sld [smem:[#allocation4 + $0x51]] }
  0x4c   : > { %538 = vrot.lane.b32.xlu0 %v536_v59, %s1642_s13  ;;  %397 = vrot.lane.b32.xlu1 %v395_v60, %s1642_s13  ;;  %v375_v59 = vmul.f32 %v374_v56, %v1738_v57  ;;  %v515_v60 = vstv %s1484_s19  ;;  %v415_v5 = vstv %s1475_s23  ;;  %s1529_s19 = sld [smem:[#allocation4 + $0x20]]  ;;  %s1541_s21 = sld [smem:[#allocation4 + $0x44]] }
  0x4d   : > { %v516_v62 = vmul.f32 %v515_v60, %v1728_v48  ;;  %v416_v7 = vmul.f32 %v415_v5, %v1738_v57  ;;  %v664_v12 = vstv %s1499_s28  ;;  %v773_v16 = vstv %s1510_s30  ;;  %s1534_s23 = sld [smem:[#allocation4 + $0x5f]]  ;;  %s1555_s28 = sld [smem:[#allocation4 + $0x14]] }
  0x4e   : > { %v704_v20 = vstv %s1503_s7  ;;  %v815_v25 = vstv %s1514_s9  ;;  %v924_v29 = vstv %s1525_s12  ;;  %s1548_s30 = sld [smem:[#allocation4 + $0x2f]]  ;;  %s1559_s7 = sld [smem:[#allocation4 + $0x22]] }
  0x4f   : > { %s1857_s9 = sld [smem:[#allocation4 + $0x7]]  ;;  %s1865_s12 = sld [smem:[#allocation4 + $0x61]] }
  0x50   : > { %647 = vrot.lane.b32.xlu0 %v645_v63, %s1641_s10  ;;  %547 = vrot.lane.b32.xlu1 %v545_v0, %s1642_s13  ;;  %v525_v63 = vmul.f32 %v524_v61, %v1738_v57  ;;  %v624_v0 = vstv %s1495_s1  ;;  %v855_v33 = vstv %s1518_s15  ;;  %s1540_s1 = sld [smem:[#allocation4 + $0x13]]  ;;  %s1882_s15 = sld [smem:[#allocation4 + $0x9]] }
  0x51   : > { %v625_v2 = vmul.f32 %v624_v0, %v1726_v47 }
  0x52   : > { %v964_v37 = vstv %s1529_s19  ;;  %s1921_s19 = sld [smem:[#allocation4 + $0x39]] }
  0x54   : > { %687 = vrot.lane.b32.xlu0 %v685_v3, %s1642_s13  ;;  %656 = vrot.lane.b32.xlu1 %v654_v4, %s1641_s10  ;;  %v634_v3 = vmul.f32 %v633_v1, %v1735_v54  ;;  %v405_v4 = vstv %s1474_s22  ;;  %s1533_s22 = sld [smem:[#allocation4 + $0x2e]]  ;;  %v1153_v1 = vstv %s1548_s30  ;;  %s2000_s30 = sld [smem:[#allocation4 + $0x1]] }
  0x55   : > { %v406_v6 = vmul.f32 %v405_v4, %v1728_v48  ;;  %v1154_v5 = vmul.f32 %v1153_v1, %v1728_v48 }
  0x56   : > { %v1073_v41 = vstv %s1540_s1  ;;  %s1929_s1 = sld [smem:[#allocation4 + $0x3a]] }
  0x58   : > { %798 = vrot.lane.b32.xlu0 %v796_v8, %s1641_s10  ;;  %696 = vrot.lane.b32.xlu1 %v694_v9, %s1642_s13  ;;  %v555_v8 = vstv %s1488_s25  ;;  %v564_v9 = vstv %s1489_s26  ;;  %s1544_s25 = sld [smem:[#allocation4 + $0x21]]  ;;  %s1545_s26 = sld [smem:[#allocation4 + $0x52]] }
  0x59   : > { %v556_v10 = vmul.f32 %v555_v8, %v1728_v48  ;;  %v565_v11 = vmul.f32 %v564_v9, %v1738_v57 }
  0x5a   : > { %v1004_v45 = vstv %s1533_s22  ;;  %s1941_s22 = sld [smem:[#allocation4 + $0xd]] }
  0x5c   : > { %838 = vrot.lane.b32.xlu0 %v836_v13, %s1642_s13  ;;  %807 = vrot.lane.b32.xlu1 %v805_v14, %s1641_s10  ;;  %v673_v13 = vstv %s1500_s29  ;;  %v665_v14 = vmul.f32 %v664_v12, %v1728_v48  ;;  %s1556_s29 = sld [smem:[#allocation4 + $0x45]] }
  0x5d   : > { %v674_v15 = vmul.f32 %v673_v13, %v1738_v57  ;;  %v313_v13 = vstv %s1857_s9  ;;  %s1521_s9 = sld [smem:[#allocation4 + $0x4]] }
  0x5e   : > { %v1113_v51 = vstv %s1544_s25  ;;  %s1972_s25 = sld [smem:[#allocation4 + $0x3d]] }
  0x5f   : > { %v1114_v56 = vmul.f32 %v1113_v51, %v1728_v48 }
  0x60   : > { %947 = vrot.lane.b32.xlu0 %v945_v17, %s1641_s10  ;;  %847 = vrot.lane.b32.xlu1 %v845_v18, %s1642_s13  ;;  %v782_v17 = vstv %s1511_s5  ;;  %v774_v18 = vmul.f32 %v773_v16, %v1726_v47  ;;  %s1549_s5 = sld [smem:[#allocation4 + $0x60]]  ;;  %v1311_v16 = vstv %s1865_s12  ;;  %s2111_s12 = sld [smem:[#allocation4 + $0x33]] }
  0x61   : > { %v783_v19 = vmul.f32 %v782_v17, %v1735_v54 }
  0x62   : > { %v1231_v60 = vstv %s1556_s29  ;;  %s1991_s29 = sld [smem:[#allocation4 + $0x3e]] }
  0x63   : > { %v1232_v0 = vmul.f32 %v1231_v60, %v1735_v54 }
  0x64   : > { %987 = vrot.lane.b32.xlu0 %v985_v21, %s1642_s13  ;;  %956 = vrot.lane.b32.xlu1 %v954_v22, %s1641_s10  ;;  %v713_v21 = vstv %s1504_s8  ;;  %v705_v22 = vmul.f32 %v704_v20, %v1728_v48  ;;  %s1560_s8 = sld [smem:[#allocation4 + $0x53]] }
  0x65   : > { %v714_v24 = vmul.f32 %v713_v21, %v1738_v57 }
  0x68   : > { %1096 = vrot.lane.b32.xlu0 %v1094_v26, %s1641_s10  ;;  %996 = vrot.lane.b32.xlu1 %v994_v27, %s1642_s13  ;;  %v824_v26 = vstv %s1515_s11  ;;  %v816_v27 = vmul.f32 %v815_v25, %v1728_v48  ;;  %s1863_s11 = sld [smem:[#allocation4 + $0x30]]  ;;  %v1312_v25 = vmul.f32 %v1311_v16, %v1738_v57 }
  0x69   : > { %v825_v28 = vmul.f32 %v824_v26, %v1738_v57 }
  0x6a   : > { %v1271_v8 = vstv %s1560_s8  ;;  %s1506_s8 = sld [smem:[#allocation4 + $0x3]] }
  0x6b   : > { %v1272_v12 = vmul.f32 %v1271_v8, %v1738_v57 }
  0x6c   : > { %354 = vrot.lane.b32.xlu0 %v352_v30, %s1641_s10  ;;  %1105 = vrot.lane.b32.xlu1 %v1103_v31, %s1641_s10  ;;  %v933_v30 = vstv %s1526_s14  ;;  %v925_v31 = vmul.f32 %v924_v29, %v1726_v47  ;;  %s1869_s14 = sld [smem:[#allocation4 + $0x8]] }
  0x6d   : > { %v934_v32 = vmul.f32 %v933_v30, %v1735_v54 }
  0x70   : > { %1136 = vrot.lane.b32.xlu0 %v1134_v34, %s1642_s13  ;;  %1145 = vrot.lane.b32.xlu1 %v1143_v35, %s1642_s13  ;;  %v864_v34 = vstv %s1519_s16  ;;  %v856_v35 = vmul.f32 %v855_v33, %v1728_v48  ;;  %s1644_s16 = smov 112  }
  0x71   : > { %v865_v36 = vmul.f32 %v864_v34, %v1738_v57 }
  0x74   : > { %1245 = vrot.lane.b32.xlu0 %v1243_v38, %s1641_s10  ;;  %1254 = vrot.lane.b32.xlu1 %v1252_v39, %s1641_s10  ;;  %v973_v38 = vstv %s1530_s20  ;;  %v965_v39 = vmul.f32 %v964_v37, %v1728_v48  ;;  %s1925_s20 = sld [smem:[#allocation4 + $0xc]] }
  0x75   : > { %v974_v40 = vmul.f32 %v973_v38, %v1738_v57 }
  0x78   : > { %1285 = vrot.lane.b32.xlu0 %v1283_v42, %s1642_s13  ;;  %1294 = vrot.lane.b32.xlu1 %v1292_v43, %s1642_s13  ;;  %v1082_v42 = vstv %s1541_s21  ;;  %v1074_v43 = vmul.f32 %v1073_v41, %v1726_v47  ;;  %s1937_s21 = sld [smem:[#allocation4 + $0x3b]] }
  0x79   : > { %v1083_v44 = vmul.f32 %v1082_v42, %v1735_v54 }
  0x7c   : > { %324 = vrot.lane.b32.xlu0 %v322_v46, %s1641_s10  ;;  %334 = vrot.lane.b32.xlu1 %v332_v49, %s1641_s10  ;;  %v1013_v46 = vstv %s1534_s23  ;;  %v1005_v49 = vmul.f32 %v1004_v45, %v1728_v48  ;;  %s1954_s23 = sld [smem:[#allocation4 + $0x3c]] }
  0x7d   : > { %v1014_v50 = vmul.f32 %v1013_v46, %v1738_v57 }
  0x80   : > { %478 = vrot.lane.b32.xlu0 %v476_v52, %s1641_s10  ;;  %487 = vrot.lane.b32.xlu1 %v485_v53, %s1641_s10  ;;  %v1122_v52 = vstv %s1545_s26  ;;  %s1984_s26 = sld [smem:[#allocation4]] }
  0x84   : > { %367 = vrot.lane.b32.xlu0 %v365_v58, %s1642_s13  ;;  %377 = vrot.lane.b32.xlu1 %v375_v59, %s1642_s13  ;;  %v1123_v58 = vmul.f32 %v1122_v52, %v1738_v57  ;;  %v1222_v59 = vstv %s1555_s28  ;;  %s1986_s28 = sld [smem:[#allocation4 + $0x31]] }
  0x88   : > { %518 = vrot.lane.b32.xlu0 %v516_v62, %s1642_s13  ;;  %527 = vrot.lane.b32.xlu1 %v525_v63, %s1642_s13  ;;  %v1223_v63 = vmul.f32 %v1222_v59, %v1726_v47 }
  0x8c   : > { %627 = vrot.lane.b32.xlu0 %v625_v2, %s1641_s10  ;;  %636 = vrot.lane.b32.xlu1 %v634_v3, %s1641_s10  ;;  %v1162_v2 = vstv %s1549_s5  ;;  %s2002_s5 = sld [smem:[#allocation4 + $0x32]] }
  0x90   : > { %408 = vrot.lane.b32.xlu0 %v406_v6, %s1643_s6  ;;  %418 = vrot.lane.b32.xlu1 %v416_v7, %s1643_s6  ;;  %v1163_v6 = vmul.f32 %v1162_v2, %v1738_v57  ;;  %v1262_v7 = vstv %s1559_s7  ;;  %s1491_s7 = sld [smem:[#allocation4 + $0x2]] }
  0x94   : > { %558 = vrot.lane.b32.xlu0 %v556_v10, %s1643_s6  ;;  %567 = vrot.lane.b32.xlu1 %v565_v11, %s1643_s6  ;;  %v1263_v11 = vmul.f32 %v1262_v7, %v1728_v48 }
  0x98   : > { %667 = vrot.lane.b32.xlu0 %v665_v14, %s1642_s13  ;;  %676 = vrot.lane.b32.xlu1 %v674_v15, %s1642_s13  ;;  %v1302_v15 = vstv %s1863_s11  ;;  %s2104_s11 = sld [smem:[#allocation4 + $0x5]] }
  0x9c   : > { %776 = vrot.lane.b32.xlu0 %v774_v18, %s1641_s10  ;;  %785 = vrot.lane.b32.xlu1 %v783_v19, %s1641_s10  ;;  %v467_v19 = vstv %s1869_s14  ;;  %s1645_s14 = smov 51  }
  0xa0   : > { %707 = vrot.lane.b32.xlu0 %v705_v22, %s1643_s6  ;;  %716 = vrot.lane.b32.xlu1 %v714_v24, %s1643_s6  ;;  %v314_v22 = vmul.f32 %v313_v13, %v1726_v47  ;;  %v1303_v24 = vmul.f32 %v1302_v15, %v1728_v48  ;;  %v616_v48 = vstv %s1882_s15  ;;  %v1065_v13 = vstv %s1925_s20  ;;  %s2124_s15 = sld [smem:[#allocation4 + $0x34]]  ;;  %s1648_s20 = smov 48  }
  0xa4   : > { %818 = vrot.lane.b32.xlu0 %v816_v27, %s1642_s13  ;;  %827 = vrot.lane.b32.xlu1 %v825_v28, %s1642_s13  ;;  %v468_v27 = vmul.f32 %v467_v19, %v1726_v47 }
  0xa8   : > { %927 = vrot.lane.b32.xlu0 %v925_v31, %s1641_s10  ;;  %936 = vrot.lane.b32.xlu1 %v934_v32, %s1641_s10 }
  0xac   : > { %858 = vrot.lane.b32.xlu0 %v856_v35, %s1643_s6  ;;  %867 = vrot.lane.b32.xlu1 %v865_v36, %s1643_s6 }
  0xb0   : > { %967 = vrot.lane.b32.xlu0 %v965_v39, %s1642_s13  ;;  %976 = vrot.lane.b32.xlu1 %v974_v40, %s1642_s13  ;;  %v617_v40 = vmul.f32 %v616_v48, %v1726_v47 }
  0xb4   : > { %1076 = vrot.lane.b32.xlu0 %v1074_v43, %s1641_s10  ;;  %1085 = vrot.lane.b32.xlu1 %v1083_v44, %s1641_s10 }
  0xb6   : > { %v346_v53 = vpop.permute.xlu0 %345  ;;  %v499_v55 = vpop.permute.xlu1 %498 }
  0xb7   : > { %v347_v14 = vrot.slane %v346_v53, 1  ;;  %v500_v20 = vrot.slane %v499_v55, 1 }
  0xb8   : > { %1007 = vrot.lane.b32.xlu0 %v1005_v49, %s1643_s6  ;;  %1016 = vrot.lane.b32.xlu1 %v1014_v50, %s1643_s6 }
  0xb9   : > { %v348_v26 = vsel %vm327_vm9, %v346_v53, %v347_v14  ;;  %v501_v30 = vsel %vm327_vm9, %v499_v55, %v500_v20 }
  0xba   : > { %v389_v61 = vpop.permute.xlu0 %388  ;;  %v1855_v62 = vpop.permute.xlu1 %507  ;;  %v350_v33 = vadd.f32 %v348_v26, %v314_v22  ;;  %v503_v34 = vadd.f32 %v501_v30, %v468_v27  ;;  %v1066_v26 = vmul.f32 %v1065_v13, %v1726_v47 }
  0xbb   : > { %v390_v21 = vrot.slane %v389_v61, 7 }
  0xbc   : > { %1116 = vrot.lane.b32.xlu0 %v1114_v56, %s1642_s13  ;;  %1125 = vrot.lane.b32.xlu1 %v1123_v58, %s1642_s13 }
  0xbd   : > { %v391_v31 = vsel %vm370_vm10, %v390_v21, %v389_v61  ;;  %v619_v21 = vstv %s1929_s1  ;;  %s2179_s1 = sld [smem:[#allocation4 + $0x37]] }
  0xbe   : > { %v539_v3 = vpop.permute.xlu0 %538  ;;  %v1867_v4 = vpop.permute.xlu1 %397  ;;  %v393_v35 = vadd.f32 %v391_v31, %v350_v33 }
  0xbf   : > { %v540_v32 = vrot.slane %v539_v3, 7  ;;  %v399_v20 = vrot.slane %v1867_v4, 7 }
  0xc0   : > { %1225 = vrot.lane.b32.xlu0 %v1223_v63, %s1641_s10  ;;  %1234 = vrot.lane.b32.xlu1 %v1232_v0, %s1641_s10  ;;  %s1895_s10 = sld [smem:[#allocation4 + $0xa]] }
  0xc1   : > { %v541_v38 = vsel %vm370_vm10, %v540_v32, %v539_v3  ;;  %v620_v32 = vmul.f32 %v619_v21, %v1735_v54 }
  0xc2   : > { %v648_v9 = vpop.permute.xlu0 %647  ;;  %v1875_v10 = vpop.permute.xlu1 %547  ;;  %v543_v44 = vadd.f32 %v541_v38, %v503_v34  ;;  %v400_v34 = vsel %vm370_vm10, %v399_v20, %v1867_v4  ;;  %v1214_v38 = vstv %s1941_s22  ;;  %s1650_s22 = smov 46  }
  0xc3   : > { %v649_v57 = vrot.slane %v648_v9, 1 }
  0xc4   : > { %1156 = vrot.lane.b32.xlu0 %v1154_v5, %s1643_s6  ;;  %1165 = vrot.lane.b32.xlu1 %v1163_v6, %s1643_s6 }
  0xc5   : > { %v650_v41 = vsel %vm327_vm9, %v648_v9, %v649_v57 }
  0xc6   : > { %v688_v17 = vpop.permute.xlu0 %687  ;;  %v1886_v18 = vpop.permute.xlu1 %656  ;;  %v765_v42 = vstv %s1895_s10  ;;  %v652_v51 = vadd.f32 %v650_v41, %v617_v40  ;;  %s2129_s10 = sld [smem:[#allocation4 + $0x6]] }
  0xc7   : > { %v689_v39 = vrot.slane %v688_v17, 7  ;;  %v766_v52 = vmul.f32 %v765_v42, %v1726_v47 }
  0xc8   : > { %1265 = vrot.lane.b32.xlu0 %v1263_v11, %s1642_s13  ;;  %1274 = vrot.lane.b32.xlu1 %v1272_v12, %s1642_s13  ;;  %s1905_s13 = sld [smem:[#allocation4 + $0xb]]  ;;  %v470_v11 = vstv %s1921_s19  ;;  %v509_v12 = vrot.slane %v1855_v62, 1  ;;  %s2154_s19 = sld [smem:[#allocation4 + $0x36]] }
  0xc9   : > { %v690_v49 = vsel %vm370_vm10, %v689_v39, %v688_v17 }
  0xca   : > { %v799_v28 = vpop.permute.xlu0 %798  ;;  %v1898_v29 = vpop.permute.xlu1 %696  ;;  %v692_v58 = vadd.f32 %v690_v49, %v652_v51  ;;  %v510_v27 = vsel %vm327_vm9, %v1855_v62, %v509_v12  ;;  %v1215_v49 = vmul.f32 %v1214_v38, %v1726_v47 }
  0xcb   : > { %v800_v43 = vrot.slane %v799_v28, 7 }
  0xcc   : > { %1305 = vrot.lane.b32.xlu0 %v1303_v24, %s1643_s6  ;;  %1314 = vrot.lane.b32.xlu1 %v1312_v25, %s1643_s6  ;;  %s1917_s6 = sld [smem:[#allocation4 + $0x38]]  ;;  %v471_v24 = vmul.f32 %v470_v11, %v1735_v54  ;;  %v549_v25 = vrot.slane %v1875_v10, 7 }
  0xcd   : > { %v801_v53 = vsel %vm327_vm9, %v800_v43, %v799_v28  ;;  %v658_v28 = vrot.slane %v1886_v18, 1  ;;  %v698_v43 = vrot.slane %v1898_v29, 7 }
  0xce   : > { %v839_v36 = vpop.permute.xlu0 %838  ;;  %v1907_v37 = vpop.permute.xlu1 %807  ;;  %v916_v55 = vstv %s1905_s13  ;;  %v803_v0 = vadd.f32 %v801_v53, %v766_v52  ;;  %v512_v39 = vadd.f32 %v510_v27, %v471_v24  ;;  %v550_v62 = vsel %vm370_vm10, %v549_v25, %v1875_v10  ;;  %s1646_s13 = smov 50  }
  0xcf   : > { %v840_v50 = vrot.slane %v839_v36, 7  ;;  %v917_v1 = vmul.f32 %v916_v55, %v1726_v47  ;;  %v659_v42 = vsel %vm327_vm9, %v1886_v18, %v658_v28  ;;  %v1217_v25 = vstv %s1991_s29 }
  0xd0   : > { %426 = vrot.lane.b32.xlu0 %v393_v35, %s1644_s16  ;;  %v768_v35 = vstv %s1937_s21  ;;  %v552_v18 = vadd.f32 %v550_v62, %v512_v39  ;;  %v661_v53 = vadd.f32 %v659_v42, %v620_v32  ;;  %s1649_s21 = smov 47  }
  0xd1   : > { %v841_v61 = vsel %vm370_vm10, %v840_v50, %v839_v36  ;;  %v769_v51 = vmul.f32 %v768_v35, %v1735_v54 }
  0xd2   : > { %v948_v45 = vpop.permute.xlu0 %947  ;;  %v1914_v46 = vpop.permute.xlu1 %847  ;;  %v843_v3 = vadd.f32 %v841_v61, %v803_v0  ;;  %v316_v8 = vstv %s1917_s6  ;;  %s1647_s6 = smov 49  }
  0xd3   : > { %v949_v56 = vrot.slane %v948_v45, 7  ;;  %v317_v16 = vmul.f32 %v316_v8, %v1735_v54  ;;  %v849_v55 = vrot.slane %v1914_v46, 7  ;;  %v1068_v8 = vstv %s1972_s25 }
  0xd4   : > { %576 = vrot.lane.b32.xlu0 %v543_v44, %s1644_s16  ;;  %v809_v44 = vrot.slane %v1907_v37, 7 }
  0xd5   : > { %v950_v2 = vsel %vm327_vm9, %v949_v56, %v948_v45  ;;  %v919_v56 = vstv %s1954_s23  ;;  %s1651_s23 = smov 45  }
  0xd6   : > { %v988_v59 = vpop.permute.xlu0 %987  ;;  %v1927_v60 = vpop.permute.xlu1 %956  ;;  %v952_v9 = vadd.f32 %v950_v2, %v917_v1 }
  0xd7   : > { %v989_v63 = vrot.slane %v988_v59, 7  ;;  %v958_v61 = vrot.slane %v1927_v60, 7 }
  0xd8   : > { %725 = vrot.lane.b32.xlu0 %v692_v58, %s1644_s16  ;;  %v699_v58 = vsel %vm370_vm10, %v698_v43, %v1898_v29 }
  0xd9   : > { %v990_v7 = vsel %vm370_vm10, %v989_v63, %v988_v59  ;;  %v810_v59 = vsel %vm327_vm9, %v809_v44, %v1907_v37 }
  0xda   : > { %v1097_v5 = vpop.permute.xlu0 %1096  ;;  %v1935_v6 = vpop.permute.xlu1 %996  ;;  %v992_v15 = vadd.f32 %v990_v7, %v952_v9  ;;  %v812_v37 = vadd.f32 %v810_v59, %v769_v51  ;;  %v850_v7 = vsel %vm370_vm10, %v849_v55, %v1914_v46  ;;  %v959_v9 = vsel %vm327_vm9, %v958_v61, %v1927_v60 }
  0xdb   : > { %v1098_v14 = vrot.slane %v1097_v5, 7  ;;  %v998_v11 = vrot.slane %v1935_v6, 7  ;;  %v308_v46 = vstv %s1986_s28  ;;  %v1069_v60 = vmul.f32 %v1068_v8, %v1735_v54 }
  0xdc   : > { %876 = vrot.lane.b32.xlu0 %v843_v3, %s1644_s16  ;;  %v920_v3 = vmul.f32 %v919_v56, %v1735_v54  ;;  %v309_v32 = vmul.f32 %v308_v46, %v1735_v54 }
  0xdd   : > { %v1099_v30 = vsel %vm327_vm9, %v1098_v14, %v1097_v5  ;;  %v701_v5 = vadd.f32 %v699_v58, %v661_v53 }
  0xde   : > { %v355_v17 = vpop.permute.xlu0 %354  ;;  %v1948_v19 = vpop.permute.xlu1 %1105  ;;  %v1101_v40 = vadd.f32 %v1099_v30, %v1066_v26  ;;  %v961_v24 = vadd.f32 %v959_v9, %v920_v3  ;;  %v999_v26 = vsel %vm370_vm10, %v998_v11, %v1935_v6 }
  0xdf   : > { %v356_v22 = vrot.slane %v355_v17, 1  ;;  %v1107_v12 = vrot.slane %v1948_v19, 7 }
  0xe0   : > { %1025 = vrot.lane.b32.xlu0 %v992_v15, %s1644_s16  ;;  %v1001_v39 = vadd.f32 %v999_v26, %v961_v24 }
  0xe1   : > { %v357_v31 = vsel %vm327_vm9, %v355_v17, %v356_v22  ;;  %v305_v17 = vstv %s1984_s26  ;;  %v852_v22 = vadd.f32 %v850_v7, %v812_v37  ;;  %v1108_v27 = vsel %vm327_vm9, %v1107_v12, %v1948_v19 }
  0xe2   : > { %v359_v33 = vadd.f32 %v357_v31, %v317_v16  ;;  %v1137_v48 = vpop.permute.xlu0 %1136  ;;  %v1964_v57 = vpop.permute.xlu1 %1145  ;;  %v306_v31 = vmul.f32 %v305_v17, %v1726_v47  ;;  %v1110_v62 = vadd.f32 %v1108_v27, %v1069_v60 }
  0xe3   : > { %v1138_v36 = vrot.slane %v1137_v48, 7  ;;  %v1147_v28 = vrot.slane %v1964_v57, 7 }
  0xe4   : > { %v402_v41 = vadd.f32 %v400_v34, %v359_v33  ;;  %v459_v33 = vstv %s2000_s30  ;;  %v462_v34 = vstv %s2002_s5 }
  0xe5   : > { %v1139_v4 = vsel %vm370_vm10, %v1138_v36, %v1137_v48 }
  0xe6   : > { %v1141_v45 = vadd.f32 %v1139_v4, %v1101_v40  ;;  %443 = vrot.lane.b32.xlu1 %v402_v41, %s1644_s16  ;;  %v1246_v10 = vpop.permute.xlu0 %1245  ;;  %v1981_v50 = vpop.permute.xlu1 %1254  ;;  %v1218_v40 = vmul.f32 %v1217_v25, %v1735_v54  ;;  %v1148_v41 = vsel %vm370_vm10, %v1147_v28, %v1964_v57 }
  0xe7   : > { %v1247_v52 = vrot.slane %v1246_v10, 7  ;;  %v1256_v30 = vrot.slane %v1981_v50, 7  ;;  %v1150_v55 = vadd.f32 %v1148_v41, %v1110_v62 }
  0xe8   : > { %1174 = vrot.lane.b32.xlu0 %v1141_v45, %s1644_s16  ;;  %v460_v45 = vmul.f32 %v459_v33, %v1726_v47 }
  0xe9   : > { %v1248_v63 = vsel %vm327_vm9, %v1247_v52, %v1246_v10  ;;  %v1257_v42 = vsel %vm327_vm9, %v1256_v30, %v1981_v50 }
  0xea   : > { %v1250_v0 = vadd.f32 %v1248_v63, %v1215_v49  ;;  %592 = vrot.lane.b32.xlu1 %v552_v18, %s1644_s16  ;;  %v1286_v1 = vpop.permute.xlu0 %1285  ;;  %v1295_v2 = vpop.permute.xlu1 %1294  ;;  %v463_v49 = vmul.f32 %v462_v34, %v1735_v54  ;;  %v1259_v56 = vadd.f32 %v1257_v42, %v1218_v40 }
  0xeb   : > { %v1287_v29 = vrot.slane %v1286_v1, 7  ;;  %v1296_v43 = vrot.slane %v1295_v2, 7 }
  0xed   : > { %v1288_v13 = vsel %vm370_vm10, %v1287_v29, %v1286_v1  ;;  %v1297_v50 = vsel %vm370_vm10, %v1296_v43, %v1295_v2 }
  0xee   : > { %v1290_v14 = vadd.f32 %v1288_v13, %v1250_v0  ;;  %741 = vrot.lane.b32.xlu1 %v701_v5, %s1644_s16  ;;  %v325_v15 = vpop.permute.xlu0 %324  ;;  %v335_v16 = vpop.permute.xlu1 %334  ;;  %v1299_v5 = vadd.f32 %v1297_v50, %v1259_v56  ;;  %v757_v50 = vstv %s1506_s8 }
  0xef   : > { %v326_v20 = vrot.slane %v325_v15, 1  ;;  %v336_v21 = vrot.slane %v335_v16, 1 }
  0xf0   : > { %1323 = vrot.lane.b32.xlu0 %v1290_v14, %s1644_s16 }
  0xf1   : > { %v328_v36 = vsel %vm327_vm9, %v325_v15, %v326_v20  ;;  %v337_v6 = vsel %vm327_vm9, %v335_v16, %v336_v21 }
  0xf2   : > { %892 = vrot.lane.b32.xlu1 %v852_v22, %s1644_s16  ;;  %v479_v48 = vpop.permute.xlu0 %478  ;;  %v488_v35 = vpop.permute.xlu1 %487  ;;  %v330_v44 = vadd.f32 %v328_v36, %v306_v31  ;;  %v339_v4 = vadd.f32 %v337_v6, %v309_v32 }
  0xf3   : > { %v480_v38 = vrot.slane %v479_v48, 1  ;;  %v489_v19 = vrot.slane %v488_v35, 1 }
  0xf5   : > { %v481_v52 = vsel %vm327_vm9, %v479_v48, %v480_v38  ;;  %v490_v18 = vsel %vm327_vm9, %v488_v35, %v489_v19 }
  0xf6   : > { %1041 = vrot.lane.b32.xlu1 %v1001_v39, %s1644_s16  ;;  %v368_v10 = vpop.permute.xlu0 %367  ;;  %v378_v51 = vpop.permute.xlu1 %377  ;;  %v483_v59 = vadd.f32 %v481_v52, %v460_v45  ;;  %v492_v54 = vadd.f32 %v490_v18, %v463_v49 }
  0xf7   : > { %v369_v53 = vrot.slane %v368_v10, 7  ;;  %v379_v57 = vrot.slane %v378_v51, 7 }
  0xf9   : > { %v371_v58 = vsel %vm370_vm10, %v369_v53, %v368_v10  ;;  %v380_v47 = vsel %vm370_vm10, %v379_v57, %v378_v51  ;;  %v608_v51 = vstv %s1491_s7  ;;  %v2099_v57 = vld [vmem:[#allocation2] ss:$2 sm:$0x7] }
  0xfa   : > { %v373_v61 = vadd.f32 %v371_v58, %v330_v44  ;;  %v382_v63 = vadd.f32 %v380_v47, %v339_v4  ;;  %1190 = vrot.lane.b32.xlu1 %v1150_v55, %s1644_s16  ;;  %v519_v0 = vpop.permute.xlu0 %518  ;;  %v528_v1 = vpop.permute.xlu1 %527  ;;  %v609_v55 = vmul.f32 %v2099_v57, %v608_v51 }
  0xfb   : > { %v520_v3 = vrot.slane %v519_v0, 7  ;;  %v529_v29 = vrot.slane %v528_v1, 7 }
  0xfd   : > { %v521_v37 = vsel %vm370_vm10, %v520_v3, %v519_v0  ;;  %v530_v7 = vsel %vm370_vm10, %v529_v29, %v528_v1  ;;  %v908_v3 = vstv %s1521_s9 }
  0xfe   : > { %v523_v2 = vadd.f32 %v521_v37, %v483_v59  ;;  %v532_v8 = vadd.f32 %v530_v7, %v492_v54  ;;  %1339 = vrot.lane.b32.xlu1 %v1299_v5, %s1644_s16  ;;  %v628_v9 = vpop.permute.xlu0 %627  ;;  %v2049_v11 = vpop.permute.xlu1 %636  ;;  %v758_v54 = vmul.f32 %v2099_v57, %v757_v50  ;;  %s2141_s16 = sld [smem:[#allocation4 + $0x35]] }
  0xff   : > { %v629_v52 = vrot.slane %v628_v9, 1 }
 0x101   : > { %v630_v58 = vsel %vm327_vm9, %v628_v9, %v629_v52 }
 0x102   : > { %v409_v12 = vpop.permute.xlu0 %408  ;;  %v419_v13 = vpop.permute.xlu1 %418 }
 0x103   : > { %v410_v14 = vrot.slane %v409_v12, 7  ;;  %v420_v15 = vrot.slane %v419_v13, 7 }
 0x105   : > { %v412_v16 = vsel %vm411_vm11, %v410_v14, %v409_v12  ;;  %v421_v17 = vsel %vm411_vm11, %v420_v15, %v419_v13  ;;  %v909_v12 = vmul.f32 %v2099_v57, %v908_v3 }
 0x106   : > { %v414_v20 = vadd.f32 %v412_v16, %v373_v61  ;;  %v2053_v46 = vadd.f32 %v421_v17, %v382_v63  ;;  %v559_v21 = vpop.permute.xlu0 %558  ;;  %v568_v22 = vpop.permute.xlu1 %567  ;;  %v632_v63 = vadd.f32 %v630_v58, %v609_v55 }
 0x107   : > { %v560_v24 = vrot.slane %v559_v21, 7  ;;  %v569_v60 = vrot.slane %v568_v22, 7 }
 0x109   : > { %v561_v25 = vsel %vm411_vm11, %v560_v24, %v559_v21  ;;  %v570_v26 = vsel %vm411_vm11, %v569_v60, %v568_v22 }
 0x10a   : > { %v2057_v27 = vadd.f32 %v561_v25, %v523_v2  ;;  %v2059_v28 = vadd.f32 %v570_v26, %v532_v8  ;;  %v668_v30 = vpop.permute.xlu0 %667  ;;  %v2061_v31 = vpop.permute.xlu1 %676 }
 0x10b   : > { %v669_v56 = vrot.slane %v668_v30, 7 }
 0x10d   : > { %v670_v0 = vsel %vm370_vm10, %v669_v56, %v668_v30  ;;  %v1057_v30 = vstv %s2104_s11 }
 0x10e   : > { %v777_v32 = vpop.permute.xlu0 %776  ;;  %v2063_v33 = vpop.permute.xlu1 %785  ;;  %v672_v14 = vadd.f32 %v670_v0, %v632_v63 }
 0x10f   : > { %v778_v47 = vrot.slane %v777_v32, 1 }
 0x111   : > { %v779_v5 = vsel %vm327_vm9, %v777_v32, %v778_v47 }
 0x112   : > { %v708_v48 = vpop.permute.xlu0 %707  ;;  %v2065_v34 = vpop.permute.xlu1 %716  ;;  %v781_v15 = vadd.f32 %v779_v5, %v758_v54 }
 0x113   : > { %v709_v1 = vrot.slane %v708_v48, 7 }
 0x115   : > { %v710_v16 = vsel %vm411_vm11, %v709_v1, %v708_v48 }
 0x116   : > { %v819_v35 = vpop.permute.xlu0 %818  ;;  %v2067_v6 = vpop.permute.xlu1 %827  ;;  %v712_v48 = vadd.f32 %v710_v16, %v672_v14  ;;  %v1206_v16 = vstv %s2129_s10 }
 0x117   : > { %v820_v37 = vrot.slane %v819_v35, 7 }
 0x119   : > { %v821_v21 = vsel %vm370_vm10, %v820_v37, %v819_v35  ;;  %v2151_v37 = vld [vmem:[#allocation2 + $0x1] ss:$2 sm:$0x7] }
 0x11a   : > { %v928_v36 = vpop.permute.xlu0 %927  ;;  %v2071_v19 = vpop.permute.xlu1 %936  ;;  %v823_v51 = vadd.f32 %v821_v21, %v781_v15 }
 0x11b   : > { %v929_v7 = vrot.slane %v928_v36, 1 }
 0x11e   : > { %v2069_v38 = vpop.permute.xlu0 %858  ;;  %v2075_v62 = vpop.permute.xlu1 %867 }
 0x11f   : > { %v860_v17 = vrot.slane %v2069_v38, 7 }
 0x121   : > { %v861_v35 = vsel %vm411_vm11, %v860_v17, %v2069_v38  ;;  %v638_v38 = vrot.slane %v2049_v11, 1 }
 0x122   : > { %v2073_v39 = vpop.permute.xlu0 %967  ;;  %v2081_v42 = vpop.permute.xlu1 %976 }
 0x123   : > { %v969_v22 = vrot.slane %v2073_v39, 7 }
 0x126   : > { %v2077_v40 = vpop.permute.xlu0 %1076  ;;  %v2085_v44 = vpop.permute.xlu1 %1085 }
 0x12a   : > { %v2079_v41 = vpop.permute.xlu0 %1007  ;;  %v2091_v49 = vpop.permute.xlu1 %1016 }
 0x12b   : > { %v1009_v55 = vrot.slane %v2079_v41, 7 }
 0x12d   : > { %v1010_v1 = vsel %vm411_vm11, %v1009_v55, %v2079_v41  ;;  %v787_v41 = vrot.slane %v2063_v33, 1 }
 0x12e   : > { %v2083_v43 = vpop.permute.xlu0 %1116  ;;  %v2095_v18 = vpop.permute.xlu1 %1125 }
 0x12f   : > { %v1118_v3 = vrot.slane %v2083_v43, 7 }
 0x131   : > { %v1119_v21 = vsel %vm370_vm10, %v1118_v3, %v2083_v43  ;;  %v788_v43 = vsel %vm327_vm9, %v2063_v33, %v787_v41 }
 0x132   : > { %v2087_v4 = vpop.permute.xlu0 %1225  ;;  %v2107_v29 = vpop.permute.xlu1 %1234 }
 0x136   : > { %v2089_v45 = vpop.permute.xlu0 %1156  ;;  %v2121_v60 = vpop.permute.xlu1 %1165 }
 0x13a   : > { %v2093_v10 = vpop.permute.xlu0 %1265  ;;  %v2137_v50 = vpop.permute.xlu1 %1274 }
 0x13b   : > { %v1267_v55 = vrot.slane %v2093_v10, 7 }
 0x13d   : > { %v1268_v3 = vsel %vm370_vm10, %v1267_v55, %v2093_v10 }
 0x13e   : > { %v2097_v53 = vpop.permute.xlu0 %1305  ;;  %v2162_v17 = vpop.permute.xlu1 %1314 }
 0x142   : > { %v427_v59 = vpop.permute.xlu0 %426 }
 0x143   : > { %v428_v61 = vrot.slane %v427_v59, 1 }
 0x145   : > { %v430_v2 = vsel %vm429_vm12, %v427_v59, %v428_v61  ;;  %v611_v59 = vstv %s2111_s12  ;;  %v863_v61 = vadd.f32 %v861_v35, %v823_v51  ;;  %v829_v51 = vrot.slane %v2067_v6, 7 }
 0x146   : > { %v432_v8 = vadd.f32 %v430_v2, %v414_v20  ;;  %v577_v9 = vpop.permute.xlu0 %576  ;;  %v930_v20 = vsel %vm327_vm9, %v928_v36, %v929_v7  ;;  %v1078_v36 = vrot.slane %v2077_v40, 1  ;;  %v612_v7 = vmul.f32 %v2151_v37, %v611_v59 }
 0x147   : > { %v578_v13 = vrot.slane %v577_v9, 1  ;;  %v932_v52 = vadd.f32 %v930_v20, %v909_v12  ;;  %v760_v12 = vstv %s2124_s15  ;;  %v1158_v20 = vrot.slane %v2089_v45, 7 }
 0x148   : > { %434 = vrot.lane.b32.xlu0 %v432_v8, %s1645_s14  ;;  %v1079_v0 = vsel %vm327_vm9, %v2077_v40, %v1078_v36  ;;  %v678_v40 = vrot.slane %v2061_v31, 7  ;;  %v1207_v35 = vmul.f32 %v2099_v57, %v1206_v16 }
 0x149   : > { %v579_v24 = vsel %vm429_vm12, %v577_v9, %v578_v13  ;;  %v639_v9 = vsel %vm327_vm9, %v2049_v11, %v638_v38  ;;  %v1227_v11 = vrot.slane %v2087_v4, 1  ;;  %v1159_v36 = vsel %vm411_vm11, %v1158_v20, %v2089_v45 }
 0x14a   : > { %v581_v25 = vadd.f32 %v579_v24, %v2057_v27  ;;  %v726_v26 = vpop.permute.xlu0 %725  ;;  %v970_v27 = vsel %vm370_vm10, %v969_v22, %v2073_v39  ;;  %v1058_v39 = vmul.f32 %v2099_v57, %v1057_v30  ;;  %v641_v24 = vadd.f32 %v639_v9, %v612_v7 }
 0x14b   : > { %v727_v32 = vrot.slane %v726_v26, 1  ;;  %v972_v63 = vadd.f32 %v970_v27, %v932_v52  ;;  %v761_v30 = vmul.f32 %v2151_v37, %v760_v12  ;;  %v938_v57 = vrot.slane %v2071_v19, 1 }
 0x14c   : > { %583 = vrot.lane.b32.xlu0 %v581_v25, %s1646_s13  ;;  %v1081_v14 = vadd.f32 %v1079_v0, %v1058_v39  ;;  %v830_v45 = vsel %vm370_vm10, %v829_v51, %v2067_v6  ;;  %v978_v6 = vrot.slane %v2081_v42, 7 }
 0x14d   : > { %v728_v56 = vsel %vm429_vm12, %v726_v26, %v727_v32  ;;  %v1012_v15 = vadd.f32 %v1010_v1, %v972_v63  ;;  %v679_v26 = vsel %vm370_vm10, %v678_v40, %v2061_v31  ;;  %v718_v32 = vrot.slane %v2065_v34, 7 }
 0x14e   : > { %v730_v58 = vadd.f32 %v728_v56, %v712_v48  ;;  %v877_v47 = vpop.permute.xlu0 %876  ;;  %v911_v48 = vstv %s2141_s16  ;;  %v1121_v52 = vadd.f32 %v1119_v21, %v1081_v14  ;;  %v1228_v31 = vsel %vm327_vm9, %v2087_v4, %v1227_v11 }
 0x14f   : > { %v878_v54 = vrot.slane %v877_v47, 1  ;;  %v681_v56 = vadd.f32 %v679_v26, %v641_v24  ;;  %v790_v38 = vadd.f32 %v788_v43, %v761_v30  ;;  %v1230_v63 = vadd.f32 %v1228_v31, %v1207_v35 }
 0x150   : > { %732 = vrot.lane.b32.xlu0 %v730_v58, %s1647_s6  ;;  %v912_v58 = vmul.f32 %v2151_v37, %v911_v48  ;;  %v1161_v39 = vadd.f32 %v1159_v36, %v1121_v52  ;;  %v1087_v40 = vrot.slane %v2085_v44, 1  ;;  %v1018_v24 = vrot.slane %v2091_v49, 7 }
 0x151   : > { %v879_v5 = vsel %vm429_vm12, %v877_v47, %v878_v54  ;;  %v1060_v47 = vstv %s2154_s19  ;;  %v719_v54 = vsel %vm411_vm11, %v718_v32, %v2065_v34  ;;  %v1270_v41 = vadd.f32 %v1268_v3, %v1230_v63  ;;  %s212_s19 = scalar_lea.vmem %s2293_s4, %s1569_s24 }
 0x152   : > { %v881_v2 = vadd.f32 %v879_v5, %v863_v61  ;;  %v1026_v8 = vpop.permute.xlu0 %1025  ;;  %v1307_v5 = vrot.slane %v2097_v53, 7  ;;  %v721_v12 = vadd.f32 %v719_v54, %v681_v56  ;;  %v1088_v26 = vsel %vm327_vm9, %v2085_v44, %v1087_v40 }
 0x153   : > { %v1027_v13 = vrot.slane %v1026_v8, 1  ;;  %v1236_v30 = vrot.slane %v2107_v29, 1  ;;  %v1019_v36 = vsel %vm411_vm11, %v1018_v24, %v2091_v49  ;;  %v1276_v56 = vrot.slane %v2137_v50, 7 }
 0x154   : > { %883 = vrot.lane.b32.xlu0 %v881_v2, %s1648_s20  ;;  %v939_v2 = vsel %vm327_vm9, %v2071_v19, %v938_v57  ;;  %v832_v19 = vadd.f32 %v830_v45, %v790_v38  ;;  %v1308_v21 = vsel %vm411_vm11, %v1307_v5, %v2097_v53 }
 0x155   : > { %v1028_v22 = vsel %vm429_vm12, %v1026_v8, %v1027_v13  ;;  %v869_v8 = vrot.slane %v2075_v62, 7  ;;  %v1209_v13 = vstv %s2179_s1  ;;  %v941_v16 = vadd.f32 %v939_v2, %v912_v58 }
 0x156   : > { %v1030_v25 = vadd.f32 %v1028_v22, %v1012_v15  ;;  %v979_v22 = vsel %vm370_vm10, %v978_v6, %v2081_v42  ;;  %v1310_v48 = vadd.f32 %v1308_v21, %v1270_v41 }
 0x157   : > { %v870_v20 = vsel %vm411_vm11, %v869_v8, %v2075_v62  ;;  %v1210_v62 = vmul.f32 %v2151_v37, %v1209_v13  ;;  %v981_v52 = vadd.f32 %v979_v22, %v941_v16  ;;  %v1490_v22 = vld [vmem:[%s2291_s2 + $0x1] ss:$8 sm:$0x3] }
 0x158   : > { %v444_v27 = vpop.permute.xlu1 %443  ;;  %1032 = vrot.lane.b32.xlu0 %v1030_v25, %s1649_s21  ;;  %v872_v51 = vadd.f32 %v870_v20, %v832_v19 }
 0x159   : > { %v445_v33 = vrot.slane %v444_v27, 1 }
 0x15a   : > { %v1175_v59 = vpop.permute.xlu0 %1174 }
 0x15b   : > { %v446_v61 = vsel %vm429_vm12, %v444_v27, %v445_v33  ;;  %v1176_v4 = vrot.slane %v1175_v59, 1  ;;  %v1167_v33 = vrot.slane %v2121_v60, 7 }
 0x15c   : > { %v448_v0 = vadd.f32 %v446_v61, %v2053_v46  ;;  %v593_v1 = vpop.permute.xlu1 %592  ;;  %v1061_v46 = vmul.f32 %v2151_v37, %v1060_v47  ;;  %v1237_v37 = vsel %vm327_vm9, %v2107_v29, %v1236_v30  ;;  %v1277_v29 = vsel %vm370_vm10, %v1276_v56, %v2137_v50  ;;  %v424_v30 = vld [vmem:[%s2291_s2] ss:$8 sm:$0x3] }
 0x15d   : > { %v1177_v7 = vsel %vm429_vm12, %v1175_v59, %v1176_v4  ;;  %v594_v34 = vrot.slane %v593_v1, 1  ;;  %v1021_v59 = vadd.f32 %v1019_v36, %v981_v52  ;;  %v1168_v54 = vsel %vm411_vm11, %v1167_v33, %v2121_v60 }
 0x15e   : > { %v1179_v9 = vadd.f32 %v1177_v7, %v1161_v39  ;;  %450 = vrot.lane.b32.xlu1 %v448_v0, %s1645_s14  ;;  %v1090_v31 = vadd.f32 %v1088_v26, %v1061_v46  ;;  %v1316_v61 = vrot.slane %v2162_v17, 7 }
 0x15f   : > { %v595_v10 = vsel %vm429_vm12, %v593_v1, %v594_v34 }
 0x160   : > { %v597_v14 = vadd.f32 %v595_v10, %v2059_v28  ;;  %v742_v15 = vpop.permute.xlu1 %741  ;;  %1181 = vrot.lane.b32.xlu0 %v1179_v9, %s1650_s22  ;;  %v1127_v28 = vrot.slane %v2095_v18, 7  ;;  %v1317_v3 = vsel %vm411_vm11, %v1316_v61, %v2162_v17 }
 0x161   : > { %v743_v11 = vrot.slane %v742_v15, 1 }
 0x162   : > { %599 = vrot.lane.b32.xlu1 %v597_v14, %s1646_s13  ;;  %v1324_v25 = vpop.permute.xlu0 %1323  ;;  %v1128_v44 = vsel %vm370_vm10, %v1127_v28, %v2095_v18  ;;  %v1239_v18 = vadd.f32 %v1237_v37, %v1210_v62  ;;  %s1354_s13 = sld [smem:[#allocation3]] }
 0x163   : > { %v744_v53 = vsel %vm429_vm12, %v742_v15, %v743_v11  ;;  %v1325_v32 = vrot.slane %v1324_v25, 1  ;;  %v1130_v38 = vadd.f32 %v1128_v44, %v1090_v31  ;;  %v1520_v31 = vld [vmem:[%s2291_s2 + $0x3] ss:$8 sm:$0x3] }
 0x164   : > { %v746_v43 = vadd.f32 %v744_v53, %v721_v12  ;;  %v893_v42 = vpop.permute.xlu1 %892  ;;  %v1279_v1 = vadd.f32 %v1277_v29, %v1239_v18 }
 0x165   : > { %v1326_v35 = vsel %vm429_vm12, %v1324_v25, %v1325_v32  ;;  %v894_v27 = vrot.slane %v893_v42, 1  ;;  %v1170_v0 = vadd.f32 %v1168_v54, %v1130_v38  ;;  %v1505_v32 = vld [vmem:[%s2291_s2 + $0x2] ss:$8 sm:$0x3] }
 0x166   : > { %v1328_v55 = vadd.f32 %v1326_v35, %v1310_v48  ;;  %748 = vrot.lane.b32.xlu1 %v746_v43, %s1647_s6  ;;  %v1319_v50 = vadd.f32 %v1317_v3, %v1279_v1 }
 0x167   : > { %v895_v58 = vsel %vm429_vm12, %v893_v42, %v894_v27 }
 0x168   : > { %v897_v57 = vadd.f32 %v895_v58, %v872_v51  ;;  %v1042_v47 = vpop.permute.xlu1 %1041  ;;  %1330 = vrot.lane.b32.xlu0 %v1328_v55, %s1651_s23 }
 0x169   : > { %v1043_v49 = vrot.slane %v1042_v47, 1 }
 0x16a   : > { %899 = vrot.lane.b32.xlu1 %v897_v57, %s1648_s20 }
 0x16b   : > { %v1044_v4 = vsel %vm429_vm12, %v1042_v47, %v1043_v49  ;;  %v1535_v47 = vld [vmem:[%s2291_s2 + $0x4] ss:$8 sm:$0x3] }
 0x16c   : > { %v1046_v45 = vadd.f32 %v1044_v4, %v1021_v59  ;;  %v1191_v63 = vpop.permute.xlu1 %1190 }
 0x16d   : > { %v1192_v39 = vrot.slane %v1191_v63, 1 }
 0x16e   : > { %1048 = vrot.lane.b32.xlu1 %v1046_v45, %s1649_s21  ;;  %v1550_v45 = vld [vmem:[%s2291_s2 + $0x5] ss:$8 sm:$0x3] }
 0x16f   : > { %v1193_v5 = vsel %vm429_vm12, %v1191_v63, %v1192_v39 }
 0x170   : > { %v1195_v60 = vadd.f32 %v1193_v5, %v1170_v0  ;;  %v1340_v7 = vpop.permute.xlu1 %1339 }
 0x171   : > { %v1341_v34 = vrot.slane %v1340_v7, 1 }
 0x172   : > { %1197 = vrot.lane.b32.xlu1 %v1195_v60, %s1650_s22  ;;  %v1565_v60 = vld [vmem:[%s2291_s2 + $0x6] ss:$8 sm:$0x3] }
 0x173   : > { %v1342_v2 = vsel %vm429_vm12, %v1340_v7, %v1341_v34 }
 0x174   : > { %v1344_v8 = vadd.f32 %v1342_v2, %v1319_v50 }
 0x176   : > { %1346 = vrot.lane.b32.xlu1 %v1344_v8, %s1651_s23 }
 0x1ba   : > { %v435_v6 = vpop.permute.xlu0 %434 }
 0x1bb   : > { %v436_v15 = vrot.slane %v435_v6, 1 }
 0x1bd   : > { %v438_v53 = vsel %vm437_vm14, %v435_v6, %v436_v15 }
 0x1be   : > { %v584_v9 = vpop.permute.xlu0 %583  ;;  %v440_v33 = vmul.f32 %v438_v53, %v424_v30 }
 0x1bf   : > { %v585_v41 = vrot.slane %v584_v9, 1 }
 0x1c1   : > { %v587_v24 = vsel %vm586_vm13, %v584_v9, %v585_v41 }
 0x1c2   : > { %v733_v46 = vpop.permute.xlu0 %732  ;;  %v589_v51 = vmul.f32 %v1490_v22, %v587_v24 }
 0x1c3   : > { %v734_v19 = vrot.slane %v733_v46, 1 }
 0x1c4   : > { %v590_v18 = vadd.f32 %v589_v51, %v440_v33 }
 0x1c5   : > { %v736_v62 = vsel %vm735_vm15, %v733_v46, %v734_v19 }
 0x1c6   : > { %v884_v10 = vpop.permute.xlu0 %883  ;;  %v738_v56 = vmul.f32 %v1505_v32, %v736_v62 }
 0x1c7   : > { %v885_v28 = vrot.slane %v884_v10, 1 }
 0x1c8   : > { %v739_v0 = vadd.f32 %v738_v56, %v590_v18 }
 0x1c9   : > { %v887_v36 = vsel %vm886_vm0, %v884_v10, %v885_v28  ;;  %v1363_v28 = vld [vmem:[%s1718_s27] sm:$0xff] }
 0x1ca   : > { %v1033_v13 = vpop.permute.xlu0 %1032  ;;  %v889_v54 = vmul.f32 %v1520_v31, %v887_v36 }
 0x1cb   : > { %v1034_v48 = vrot.slane %v1033_v13, 1 }
 0x1cc   : > { %v890_v50 = vadd.f32 %v889_v54, %v739_v0 }
 0x1cd   : > { %v1036_v49 = vsel %vm1035_vm1, %v1033_v13, %v1034_v48 }
 0x1ce   : > { %v1038_v1 = vmul.f32 %v1535_v47, %v1036_v49 }
 0x1d0   : > { %v451_v40 = vpop.permute.xlu1 %450 }
 0x1d1   : > { %v452_v16 = vrot.slane %v451_v40, 1 }
 0x1d2   : > { %v1182_v11 = vpop.permute.xlu0 %1181 }
 0x1d3   : > { %v453_v43 = vsel %vm437_vm14, %v451_v40, %v452_v16  ;;  %v1183_v44 = vrot.slane %v1182_v11, 1  ;;  %v1039_v40 = vadd.f32 %v1038_v1, %v890_v50  ;;  %v1355_v16 = vstv %s1354_s13 }
 0x1d4   : > { %v600_v12 = vpop.permute.xlu1 %599  ;;  %v455_v58 = vmul.f32 %v453_v43, %v424_v30  ;;  %v1376_v30 = vcombine.high %v1363_v28, %v1363_v28 }
 0x1d5   : > { %v601_v14 = vrot.slane %v600_v12, 1  ;;  %v1185_v63 = vsel %vm1184_vm2, %v1182_v11, %v1183_v44 }
 0x1d6   : > { %v1187_v2 = vmul.f32 %v1550_v45, %v1185_v63 }
 0x1d7   : > { %v602_v25 = vsel %vm586_vm13, %v600_v12, %v601_v14 }
 0x1d8   : > { %v749_v17 = vpop.permute.xlu1 %748  ;;  %v604_v52 = vmul.f32 %v1490_v22, %v602_v25  ;;  %v1367_v25 = vsub.s32 0, %v1721_v23 }
 0x1d9   : > { %v750_v21 = vrot.slane %v749_v17, 1 }
 0x1da   : > { %v1331_v35 = vpop.permute.xlu0 %1330  ;;  %v605_v29 = vadd.f32 %v604_v52, %v455_v58 }
 0x1db   : > { %v751_v42 = vsel %vm735_vm15, %v749_v17, %v750_v21  ;;  %v1332_v59 = vrot.slane %v1331_v35, 1  ;;  %v1188_v17 = vadd.f32 %v1187_v2, %v1039_v40 }
 0x1dc   : > { %v900_v20 = vpop.permute.xlu1 %899  ;;  %v753_v57 = vmul.f32 %v1505_v32, %v751_v42 }
 0x1dd   : > { %v901_v26 = vrot.slane %v900_v20, 1  ;;  %v1334_v7 = vsel %vm1333_vm3, %v1331_v35, %v1332_v59 }
 0x1de   : > { %v754_v3 = vadd.f32 %v753_v57, %v605_v29  ;;  %v1336_v10 = vmul.f32 %v1565_v60, %v1334_v7 }
 0x1df   : > { %v902_v55 = vsel %vm886_vm0, %v900_v20, %v901_v26  ;;  %v1371_v26 = vsub.s32 1, %v1721_v23 }
 0x1e0   : > { %v1049_v27 = vpop.permute.xlu1 %1048  ;;  %v904_v61 = vmul.f32 %v1520_v31, %v902_v55  ;;  %v1337_v15 = vadd.f32 %v1336_v10, %v1188_v17 }
 0x1e1   : > { %v1050_v37 = vrot.slane %v1049_v27, 1 }
 0x1e2   : > { %v905_v8 = vadd.f32 %v904_v61, %v754_v3 }
 0x1e3   : > { %v1051_v38 = vsel %vm1035_vm1, %v1049_v27, %v1050_v37 }
 0x1e4   : > { %v1198_v4 = vpop.permute.xlu1 %1197  ;;  %v1053_v5 = vmul.f32 %v1535_v47, %v1051_v38 }
 0x1e5   : > { %v1199_v39 = vrot.slane %v1198_v4, 1 }
 0x1e6   : > { %v1054_v12 = vadd.f32 %v1053_v5, %v905_v8 }
 0x1e7   : > { %v1200_v34 = vsel %vm1184_vm2, %v1198_v4, %v1199_v39 }
 0x1e8   : > { %v1202_v6 = vmul.f32 %v1550_v45, %v1200_v34  ;;  %v1347_v9 = vpop.permute.xlu1 %1346 }
 0x1e9   : > { %v1348_v46 = vrot.slane %v1347_v9, 1 }
 0x1ea   : > { %v1203_v41 = vadd.f32 %v1202_v6, %v1054_v12 }
 0x1eb   : > { %v1349_v13 = vsel %vm1333_vm3, %v1347_v9, %v1348_v46 }
 0x1ec   : > { %v1351_v14 = vmul.f32 %v1565_v60, %v1349_v13 }
 0x1ee   : > { %v1352_v19 = vadd.f32 %v1351_v14, %v1203_v41 }
 0x1f0   : > { %v1353_v21 = vadd.f32 %v1352_v19, %v1337_v15 }
 0x1f2   : > { %v1356_v11 = vadd.f32 %v1355_v16, %v1353_v21 }
 0x1f4   : > { %v1566_v20 = vmul.f32 -1.442695, %v1356_v11 }
 0x1f6   : > { %1605 = vpow2.f32 %v1566_v20 }
 0x200   : > { %v1606_v22 = vpop.eup %1605 }
 0x201   : > { %v1360_v24 = vadd.f32 1.0, %v1606_v22 }
 0x203   : > { %1607 = vrcp.f32 %v1360_v24 }
 0x20d   : > { %v1608_v53 = vpop.eup %1607 }
 0x20e   : > { %v1368_v32 = vrot.slane %v1608_v53, %v1367_v25  ;;  %v1372_v62 = vrot.slane %v1608_v53, %v1371_v26 }
 0x210   : > { %v1378_v48 = vmul.f32 %v1368_v32, %v1363_v28  ;;  %v1379_v43 = vmul.f32 %v1376_v30, %v1372_v62 }
 0x212   : > { %v1382_v42 = vcombine.low %v1378_v48, %v1379_v43 }
 0x214   : > { %1384 = vst [vmem:[%s212_s19] sm:$0xff] %v1382_v42 }
 0x215 PF: > { %s16_s17 = sadd.s32 1, %s1636_s17  }
 0x216   : > { %p13_p1 = scmp.ge.s32.totalorder %s16_s17, 4  }
 0x218   :  { %15 = sbr.rel (!%p13_p1) target bundleno = 3 (0x3), region = 80 }
 0x21f   :  { %1406 = vsyncpa [#allocation5], 1 }
 0x220   :  { %1408 = vsyncpa [#allocation5 + $0x1], 1 }

</bundles_post_ra>
